<compile_context>
chip_gen: v5e
topology: v5e:2x2
jax: 0.10.0
libtpu: 0.0.40
codegen_flags: <defaults>
</compile_context>

<pallas_src>
import functools

import jax
import jax.numpy as jnp
from jax import lax
from jax.experimental import pallas as pl
from jax.experimental.pallas import tpu as pltpu


def _round_up(n, m):
    return ((n + m - 1) // m) * m


def _vmem_limit_bytes():
    """Generation-aware VMEM limit: headroom on v7x (64 MiB/TC), ~100 MiB on v5e/v6e."""
    try:
        cap = getattr(pltpu.get_tpu_info(), "vmem_capacity_bytes", None)
        if cap:
            return int(max(32 << 20, min(cap - (8 << 20), 100 << 20)))
    except Exception:
        pass
    return 64 << 20


# -----------------------------------------------------------------------------
# Fused Pallas kernel: all WaveNet layers for one batch element
# -----------------------------------------------------------------------------
def _wavenet_fused_kernel(*refs, n_layers, kernel_size, dilation_rate, T, Cp,
                          max_pad, compute_dtype, has_g):
    if has_g:
        (lens_ref, x_ref, g_ref, cond_w_ref,
         w_in_ref, b_in_ref, w_rs_ref, b_rs_ref,
         out_ref, x_buf, mask_buf, acc_buf) = refs
    else:
        (lens_ref, x_ref,
         w_in_ref, b_in_ref, w_rs_ref, b_rs_ref,
         out_ref, x_buf, mask_buf, acc_buf) = refs
        g_ref = cond_w_ref = None

    K = kernel_size
    kc = (K - 1) // 2
    b = pl.program_id(0)

    # In-kernel length mask (replaces a (B, T, Cp) f32 HBM mask input).
    length = lens_ref[b]
    mask_buf[...] = (lax.broadcasted_iota(jnp.int32, (T, Cp), 0) < length
                     ).astype(jnp.float32)

    # Zero only the two halo regions; the interior is overwritten by x.
    if max_pad > 0:
        halo_zeros = jnp.zeros((max_pad, Cp), jnp.float32)
        x_buf[pl.ds(0, max_pad), :] = halo_zeros
        x_buf[pl.ds(max_pad + T, max_pad), :] = halo_zeros
    x_buf[pl.ds(max_pad, T), :] = x_ref[0]

    for l in range(n_layers):                            # static unroll
        d = dilation_rate ** l
        p = d * (K - 1) // 2
        base = max_pad - p

        # Dilated conv: K separate (T,Cp)x(Cp,2Cp) MXU dots accumulated in f32
        # (no (T, K*Cp) concat).  Centre tap == current residual stream x.
        x_cur = x_buf[pl.ds(max_pad, T), :]              # f32, sublane-aligned
        x_in = jnp.dot(x_cur.astype(compute_dtype), w_in_ref[l, kc],
                       preferred_element_type=jnp.float32)
        for k in range(K):
            if k == kc:
                continue
            tap = x_buf[pl.ds(base + k * d, T), :].astype(compute_dtype)
            x_in = x_in + jnp.dot(tap, w_in_ref[l, k],
                                  preferred_element_type=jnp.float32)
        if has_g:
            # Conditioning projection folded into the same f32 accumulation.
            x_in = x_in + jnp.dot(g_ref[0], cond_w_ref[l],
                                  preferred_element_type=jnp.float32)
        x_in = x_in + b_in_ref[l]                        # cond bias pre-folded

        # fused_add_tanh_sigmoid_multiply; gates in compute_dtype (bf16 EUP on
        # v6e/v7x; use compute_dtype=f32 on v5e / for exact checks).
        acts = (jnp.tanh(x_in[:, :Cp].astype(compute_dtype)) *
                jax.nn.sigmoid(x_in[:, Cp:].astype(compute_dtype)))

        # 1x1 res/skip conv: columns [0:Cp] = residual, [Cp:2Cp] = skip.
        rs = jnp.dot(acts.astype(compute_dtype), w_rs_ref[l],
                     preferred_element_type=jnp.float32) + b_rs_ref[l]

        if l < n_layers - 1:
            x_buf[pl.ds(max_pad, T), :] = (x_cur + rs[:, :Cp]) * mask_buf[...]
        if l == 0:
            acc_buf[...] = rs[:, Cp:]
        else:
            acc_buf[...] = acc_buf[...] + rs[:, Cp:]

    out_ref[0] = (acc_buf[...] * mask_buf[...]).astype(out_ref.dtype)


# -----------------------------------------------------------------------------
# One-time parameter preparation (stack / transpose / lane-pad / cast)
# -----------------------------------------------------------------------------
def prepare_wavenet_params(params, *, hidden_channels, kernel_size, dilation_rate,
                           n_layers, gin_channels=0, compute_dtype=jnp.bfloat16):
    assert kernel_size % 2 == 1
    C, K, L = hidden_channels, kernel_size, n_layers
    Cp = _round_up(C, 128)
    has_g = gin_channels > 0

    w_in = jnp.zeros((L, K, Cp, 2 * Cp), jnp.float32)
    b_in = jnp.zeros((L, 1, 2 * Cp), jnp.float32)
    w_rs = jnp.zeros((L, Cp, 2 * Cp), jnp.float32)
    b_rs = jnp.zeros((L, 1, 2 * Cp), jnp.float32)

    for l in range(L):
        w = jnp.transpose(params["in_w"][l], (2, 1, 0))      # (K, C, 2C)
        wk = jnp.zeros((K, Cp, 2 * Cp), jnp.float32)
        wk = wk.at[:, :C, :C].set(w[:, :, :C])               # tanh half
        wk = wk.at[:, :C, Cp:Cp + C].set(w[:, :, C:])        # sigmoid half
        w_in = w_in.at[l].set(wk)

        bb = params["in_b"][l]
        b_in = b_in.at[l, 0, :C].set(bb[:C])
        b_in = b_in.at[l, 0, Cp:Cp + C].set(bb[C:])

        r = params["rs_w"][l][:, :, 0]                       # (R, C)
        rb = params["rs_b"][l]
        if l < L - 1:                                        # res + skip halves
            w_rs = w_rs.at[l, :C, :C].set(r[:C].T)
            w_rs = w_rs.at[l, :C, Cp:Cp + C].set(r[C:].T)
            b_rs = b_rs.at[l, 0, :C].set(rb[:C])
            b_rs = b_rs.at[l, 0, Cp:Cp + C].set(rb[C:])
        else:                                                # last layer: skip only
            w_rs = w_rs.at[l, :C, Cp:Cp + C].set(r.T)
            b_rs = b_rs.at[l, 0, Cp:Cp + C].set(rb)

    prepped = {"Cp": Cp, "has_g": has_g, "compute_dtype": compute_dtype}

    if has_g:
        Gin = gin_channels
        Gp = _round_up(Gin, 128)
        cw = params["cond_w"][:, :, 0]                       # (2C*L, Gin)
        cb = params["cond_b"]
        cond_w = jnp.zeros((L, Gp, 2 * Cp), jnp.float32)
        for l in range(L):
            cl = cw[l * 2 * C:(l + 1) * 2 * C]               # (2C, Gin)
            cond_w = cond_w.at[l, :Gin, :C].set(cl[:C].T)
            cond_w = cond_w.at[l, :Gin, Cp:Cp + C].set(cl[C:].T)
            cbl = cb[l * 2 * C:(l + 1) * 2 * C]
            b_in = b_in.at[l, 0, :C].add(cbl[:C])            # fold cond bias
            b_in = b_in.at[l, 0, Cp:Cp + C].add(cbl[C:])
        prepped["cond_w"] = cond_w.astype(compute_dtype)
        prepped["Gp"] = Gp

    prepped.update(w_in=w_in.astype(compute_dtype), b_in=b_in,
                   w_rs=w_rs.astype(compute_dtype), b_rs=b_rs)
    return prepped


# -----------------------------------------------------------------------------
# Forward wrapper
# -----------------------------------------------------------------------------
def wavenet_forward_pallas(x, x_mask, g, prepped, *, hidden_channels, kernel_size,
                           dilation_rate, n_layers, lengths=None):
    """x: (B, C, T), x_mask: (B, 1, T), g: (B, Gin, T) or None -> (B, C, T)."""
    B, C, T = x.shape
    assert C == hidden_channels
    Cp = prepped["Cp"]
    cdt = prepped["compute_dtype"]
    K, L = kernel_size, n_layers

    has_g = prepped["has_g"]
    if has_g:
        assert g is not None, "params were prepped with gin_channels>0; g must be given"
    else:
        assert g is None, "params were prepped with gin_channels==0; g must be None"

    # Sublane-aligned halo: centre-tap read & residual writeback start at a
    # multiple of 8 rows.
    max_pad = _round_up(dilation_rate ** (L - 1) * (K - 1) // 2, 8)

    if lengths is None:
        # Standard prefix (length) mask assumed; see TODO(synk) at top.
        lengths = jnp.sum(x_mask.astype(jnp.float32), axis=(1, 2))
    lengths = lengths.astype(jnp.int32)

    x_p = jnp.pad(jnp.transpose(x, (0, 2, 1)).astype(jnp.float32),
                  ((0, 0), (0, 0), (0, Cp - C)))             # (B, T, Cp)

    # Grid-invariant weights: whole-array VMEM residency, single buffer.
    weight_spec = pl.BlockSpec(memory_space=pltpu.MemorySpace.VMEM)

    inputs = [x_p]
    in_specs = [pl.BlockSpec((1, T, Cp), lambda b, lens: (b, 0, 0))]
    if has_g:
        Gin = g.shape[1]
        Gp = prepped["Gp"]
        g_p = jnp.pad(jnp.transpose(g, (0, 2, 1)),
                      ((0, 0), (0, 0), (0, Gp - Gin))).astype(cdt)
        inputs += [g_p, prepped["cond_w"]]
        in_specs += [pl.BlockSpec((1, T, Gp), lambda b, lens: (b, 0, 0)),
                     weight_spec]
    inputs += [prepped["w_in"], prepped["b_in"], prepped["w_rs"], prepped["b_rs"]]
    in_specs += [weight_spec] * 4

    kernel = functools.partial(
        _wavenet_fused_kernel,
        n_layers=L, kernel_size=K, dilation_rate=dilation_rate, T=T, Cp=Cp,
        max_pad=max_pad, compute_dtype=cdt, has_g=has_g)

    grid_spec = pltpu.PrefetchScalarGridSpec(
        num_scalar_prefetch=1,
        grid=(B,),
        in_specs=in_specs,
        out_specs=pl.BlockSpec((1, T, Cp), lambda b, lens: (b, 0, 0)),
        scratch_shapes=[
            pltpu.VMEM((T + 2 * max_pad, Cp), jnp.float32),   # padded residual stream
            pltpu.VMEM((T, Cp), jnp.float32),                 # length mask
            pltpu.VMEM((T, Cp), jnp.float32),                 # f32 skip accumulator
        ])

    out_p = pl.pallas_call(
        kernel,
        out_shape=jax.ShapeDtypeStruct((B, T, Cp), x.dtype),
        grid_spec=grid_spec,
        compiler_params=pltpu.CompilerParams(
            dimension_semantics=("parallel",),
            vmem_limit_bytes=_vmem_limit_bytes()),
    )(lengths, *inputs)

    return jnp.transpose(out_p[:, :, :C], (0, 2, 1))


# -----------------------------------------------------------------------------
# Pure-JAX reference (PyTorch semantics, NCT layout) for validation
# -----------------------------------------------------------------------------
def _conv1d_ref(x, w, b, dilation=1, padding=0):
    out = lax.conv_general_dilated(
        x, w, window_strides=(1,), padding=[(padding, padding)],
        rhs_dilation=(dilation,), dimension_numbers=("NCH", "OIH", "NCH"),
    )
    return out + b[None, :, None]


def wavenet_forward_ref(x, x_mask, g, params, *, hidden_channels, kernel_size,
                        dilation_rate, n_layers):
    C = hidden_channels
    output = jnp.zeros_like(x)
    if g is not None:
        g = _conv1d_ref(g, params["cond_w"], params["cond_b"])
    for i in range(n_layers):
        dilation = dilation_rate ** i
        pad = dilation * (kernel_size - 1) // 2
        x_in = _conv1d_ref(x, params["in_w"][i], params["in_b"][i],
                           dilation=dilation, padding=pad)
        if g is not None:
            g_l = g[:, i * 2 * C:(i + 1) * 2 * C, :]
        else:
            g_l = jnp.zeros_like(x_in)
        in_act = x_in + g_l
        acts = jnp.tanh(in_act[:, :C, :]) * jax.nn.sigmoid(in_act[:, C:, :])
        rs = _conv1d_ref(acts, params["rs_w"][i], params["rs_b"][i])
        if i < n_layers - 1:
            x = (x + rs[:, :C, :]) * x_mask
            output = output + rs[:, C:, :]
        else:
            output = output + rs
    return output * x_mask


# -----------------------------------------------------------------------------
# Main
# -----------------------------------------------------------------------------
if __name__ == "__main__":
    B, C, T = 2, 32, 16
    K, DIL_RATE, N_LAYERS, GIN = 3, 2, 3, 16

    key = jax.random.PRNGKey(0)
    keys = iter(jax.random.split(key, 64))

    def rnd(shape, scale=0.1):
        return jax.random.normal(next(keys), shape, jnp.float32) * scale

    params = {
        "cond_w": rnd((2 * C * N_LAYERS, GIN, 1)),
        "cond_b": rnd((2 * C * N_LAYERS,)),
        "in_w": [rnd((2 * C, C, K)) for _ in range(N_LAYERS)],
        "in_b": [rnd((2 * C,)) for _ in range(N_LAYERS)],
        "rs_w": [rnd((2 * C if i < N_LAYERS - 1 else C, C, 1))
                 for i in range(N_LAYERS)],
        "rs_b": [rnd((2 * C if i < N_LAYERS - 1 else C,))
                 for i in range(N_LAYERS)],
    }

    x = jax.random.normal(next(keys), (B, C, T), jnp.float32)
    g = jax.random.normal(next(keys), (B, GIN, T), jnp.float32)
    lengths = jnp.array([T, T - 4])
    x_mask = (jnp.arange(T)[None, None, :] < lengths[:, None, None]).astype(jnp.float32)

    cfg = dict(hidden_channels=C, kernel_size=K,
               dilation_rate=DIL_RATE, n_layers=N_LAYERS)

    # --- with conditioning ---------------------------------------------------
    ref = wavenet_forward_ref(x, x_mask, g, params, **cfg)

    # f32 compute path (primary correctness gate, tight tolerance)
    prepped_f32 = prepare_wavenet_params(params, gin_channels=GIN,
                                         compute_dtype=jnp.float32, **cfg)
    out_f32 = jax.block_until_ready(
        wavenet_forward_pallas(x, x_mask, g, prepped_f32, **cfg))
    assert out_f32.shape == (B, C, T)
    assert jnp.allclose(out_f32, ref, atol=2e-4, rtol=2e-4), (
        float(jnp.max(jnp.abs(out_f32 - ref))))

    # bf16 MXU-feed + bf16 gating path (loose tolerance)
    prepped_bf16 = prepare_wavenet_params(params, gin_channels=GIN,
                                          compute_dtype=jnp.bfloat16, **cfg)
    out_bf16 = jax.block_until_ready(
        wavenet_forward_pallas(x, x_mask, g, prepped_bf16, **cfg))
    assert out_bf16.shape == (B, C, T)
    assert jnp.allclose(out_bf16, ref, atol=5e-2, rtol=5e-2), (
        float(jnp.max(jnp.abs(out_bf16 - ref))))

    # --- without conditioning (g=None path) ----------------------------------
    ref_ng = wavenet_forward_ref(x, x_mask, None, params, **cfg)
    prepped_ng = prepare_wavenet_params(params, gin_channels=0,
                                        compute_dtype=jnp.float32, **cfg)
    out_ng = jax.block_until_ready(
        wavenet_forward_pallas(x, x_mask, None, prepped_ng, **cfg))
    assert out_ng.shape == (B, C, T)
    assert jnp.allclose(out_ng, ref_ng, atol=2e-4, rtol=2e-4), (
        float(jnp.max(jnp.abs(out_ng - ref_ng))))

    print("KERNEL_OK")
</pallas_src>

<mosaic_0001>
module attributes {stable_mosaic.version = 11 : i64} {
  func.func @_wavenet_fused_kernel(%arg0: i32, %arg1: memref<2xi32, #tpu.memory_space<smem>>, %arg2: memref<1x16x128xf32, #tpu.memory_space<vmem>>, %arg3: memref<1x16x128xf32, #tpu.memory_space<vmem>>, %arg4: memref<3x128x256xf32, #tpu.memory_space<vmem>>, %arg5: memref<3x3x128x256xf32, #tpu.memory_space<vmem>>, %arg6: memref<3x1x256xf32, #tpu.memory_space<vmem>>, %arg7: memref<3x128x256xf32, #tpu.memory_space<vmem>>, %arg8: memref<3x1x256xf32, #tpu.memory_space<vmem>>, %arg9: memref<1x16x128xf32, #tpu.memory_space<vmem>>, %arg10: memref<32x128xf32, #tpu.memory_space<vmem>>, %arg11: memref<16x128xf32, #tpu.memory_space<vmem>>, %arg12: memref<16x128xf32, #tpu.memory_space<vmem>>) attributes {dimension_semantics = [#tpu.dimension_semantics<parallel>], iteration_bounds = array<i64: 2>, scalar_prefetch = 1 : i64, scratch_operands = 3 : i64, tpu.core_type = #tpu.core_type<tc>, window_params = [{transform_indices = @transform_0, window_bounds = array<i64: 1, 16, 128>}, {transform_indices = @transform_1, window_bounds = array<i64: 1, 16, 128>}, {pipeline_mode = #tpu.pipeline_mode<synchronous>, transform_indices = @transform_2, window_bounds = array<i64: 3, 128, 256>}, {pipeline_mode = #tpu.pipeline_mode<synchronous>, transform_indices = @transform_3, window_bounds = array<i64: 3, 3, 128, 256>}, {pipeline_mode = #tpu.pipeline_mode<synchronous>, transform_indices = @transform_4, window_bounds = array<i64: 3, 1, 256>}, {pipeline_mode = #tpu.pipeline_mode<synchronous>, transform_indices = @transform_5, window_bounds = array<i64: 3, 128, 256>}, {pipeline_mode = #tpu.pipeline_mode<synchronous>, transform_indices = @transform_6, window_bounds = array<i64: 3, 1, 256>}, {transform_indices = @transform_7, window_bounds = array<i64: 1, 16, 128>}]} {
    %0 = arith.index_cast %arg0 : i32 to index
    %1 = memref.load %arg1[%0] : memref<2xi32, #tpu.memory_space<smem>>
    %2 = tpu.iota {dimensions = array<i32: 0>} : vector<16x128xi32>
    %3 = vector.broadcast %1 : i32 to vector<16x128xi32>
    %4 = arith.cmpi slt, %2, %3 : vector<16x128xi32>
    %5 = arith.extui %4 : vector<16x128xi1> to vector<16x128xi32>
    %6 = arith.sitofp %5 : vector<16x128xi32> to vector<16x128xf32>
    %c0 = arith.constant 0 : index
    %c0_0 = arith.constant 0 : index
    %7 = vector.load %arg11[%c0, %c0_0] : memref<16x128xf32, #tpu.memory_space<vmem>>, vector<16x128xf32>
    tpu.vector_store %arg11[%c0, %c0_0], %6 {strides = array<i32>} : memref<16x128xf32, #tpu.memory_space<vmem>>, vector<16x128xf32>,
    %cst = arith.constant 0.000000e+00 : f32
    %8 = vector.broadcast %cst : f32 to vector<8x128xf32>
    %c0_1 = arith.constant 0 : index
    %c0_2 = arith.constant 0 : index
    %9 = vector.load %arg10[%c0_1, %c0_2] : memref<32x128xf32, #tpu.memory_space<vmem>>, vector<8x128xf32>
    tpu.vector_store %arg10[%c0_1, %c0_2], %8 {strides = array<i32>} : memref<32x128xf32, #tpu.memory_space<vmem>>, vector<8x128xf32>,
    %c24 = arith.constant 24 : index
    %c0_3 = arith.constant 0 : index
    %10 = vector.load %arg10[%c24, %c0_3] : memref<32x128xf32, #tpu.memory_space<vmem>>, vector<8x128xf32>
    tpu.vector_store %arg10[%c24, %c0_3], %8 {strides = array<i32>} : memref<32x128xf32, #tpu.memory_space<vmem>>, vector<8x128xf32>,
    %c0_4 = arith.constant 0 : index
    %c0_5 = arith.constant 0 : index
    %c0_6 = arith.constant 0 : index
    %11 = vector.load %arg2[%c0_4, %c0_5, %c0_6] : memref<1x16x128xf32, #tpu.memory_space<vmem>>, vector<1x16x128xf32>
    %12 = vector.shape_cast %11 : vector<1x16x128xf32> to vector<16x128xf32>
    %c8 = arith.constant 8 : index
    %c0_7 = arith.constant 0 : index
    %13 = vector.load %arg10[%c8, %c0_7] : memref<32x128xf32, #tpu.memory_space<vmem>>, vector<16x128xf32>
    tpu.vector_store %arg10[%c8, %c0_7], %12 {strides = array<i32>} : memref<32x128xf32, #tpu.memory_space<vmem>>, vector<16x128xf32>,
    %c8_8 = arith.constant 8 : index
    %c0_9 = arith.constant 0 : index
    %14 = vector.load %arg10[%c8_8, %c0_9] : memref<32x128xf32, #tpu.memory_space<vmem>>, vector<16x128xf32>
    %c0_10 = arith.constant 0 : index
    %c1 = arith.constant 1 : index
    %c0_11 = arith.constant 0 : index
    %c0_12 = arith.constant 0 : index
    %15 = vector.load %arg5[%c0_10, %c1, %c0_11, %c0_12] : memref<3x3x128x256xf32, #tpu.memory_space<vmem>>, vector<1x1x128x256xf32>
    %16 = vector.shape_cast %15 : vector<1x1x128x256xf32> to vector<128x256xf32>
    %cst_13 = arith.constant dense<0.000000e+00> : vector<16x256xf32>
    %17 = tpu.matmul %14, %16, %cst_13 {dimension_numbers = #tpu.dot_dimension_numbers<[1], [0], [0], [1], [0, 0, 1, 1], [], []>} : vector<16x128xf32>, vector<128x256xf32>, vector<16x256xf32> -> vector<16x256xf32>
    %c7 = arith.constant 7 : index
    %c0_14 = arith.constant 0 : index
    %18 = vector.load %arg10[%c7, %c0_14] : memref<32x128xf32, #tpu.memory_space<vmem>>, vector<16x128xf32>
    %c0_15 = arith.constant 0 : index
    %c0_16 = arith.constant 0 : index
    %c0_17 = arith.constant 0 : index
    %c0_18 = arith.constant 0 : index
    %19 = vector.load %arg5[%c0_15, %c0_16, %c0_17, %c0_18] : memref<3x3x128x256xf32, #tpu.memory_space<vmem>>, vector<1x1x128x256xf32>
    %20 = vector.shape_cast %19 : vector<1x1x128x256xf32> to vector<128x256xf32>
    %cst_19 = arith.constant dense<0.000000e+00> : vector<16x256xf32>
    %21 = tpu.matmul %18, %20, %cst_19 {dimension_numbers = #tpu.dot_dimension_numbers<[1], [0], [0], [1], [0, 0, 1, 1], [], []>} : vector<16x128xf32>, vector<128x256xf32>, vector<16x256xf32> -> vector<16x256xf32>
    %22 = arith.addf %17, %21 : vector<16x256xf32>
    %c9 = arith.constant 9 : index
    %c0_20 = arith.constant 0 : index
    %23 = vector.load %arg10[%c9, %c0_20] : memref<32x128xf32, #tpu.memory_space<vmem>>, vector<16x128xf32>
    %c0_21 = arith.constant 0 : index
    %c2 = arith.constant 2 : index
    %c0_22 = arith.constant 0 : index
    %c0_23 = arith.constant 0 : index
    %24 = vector.load %arg5[%c0_21, %c2, %c0_22, %c0_23] : memref<3x3x128x256xf32, #tpu.memory_space<vmem>>, vector<1x1x128x256xf32>
    %25 = vector.shape_cast %24 : vector<1x1x128x256xf32> to vector<128x256xf32>
    %cst_24 = arith.constant dense<0.000000e+00> : vector<16x256xf32>
    %26 = tpu.matmul %23, %25, %cst_24 {dimension_numbers = #tpu.dot_dimension_numbers<[1], [0], [0], [1], [0, 0, 1, 1], [], []>} : vector<16x128xf32>, vector<128x256xf32>, vector<16x256xf32> -> vector<16x256xf32>
    %27 = arith.addf %22, %26 : vector<16x256xf32>
    %c0_25 = arith.constant 0 : index
    %c0_26 = arith.constant 0 : index
    %c0_27 = arith.constant 0 : index
    %28 = vector.load %arg3[%c0_25, %c0_26, %c0_27] : memref<1x16x128xf32, #tpu.memory_space<vmem>>, vector<1x16x128xf32>
    %29 = vector.shape_cast %28 : vector<1x16x128xf32> to vector<16x128xf32>
    %c0_28 = arith.constant 0 : index
    %c0_29 = arith.constant 0 : index
    %c0_30 = arith.constant 0 : index
    %30 = vector.load %arg4[%c0_28, %c0_29, %c0_30] : memref<3x128x256xf32, #tpu.memory_space<vmem>>, vector<1x128x256xf32>
    %31 = vector.shape_cast %30 : vector<1x128x256xf32> to vector<128x256xf32>
    %cst_31 = arith.constant dense<0.000000e+00> : vector<16x256xf32>
    %32 = tpu.matmul %29, %31, %cst_31 {dimension_numbers = #tpu.dot_dimension_numbers<[1], [0], [0], [1], [0, 0, 1, 1], [], []>} : vector<16x128xf32>, vector<128x256xf32>, vector<16x256xf32> -> vector<16x256xf32>
    %33 = arith.addf %27, %32 : vector<16x256xf32>
    %c0_32 = arith.constant 0 : index
    %c0_33 = arith.constant 0 : index
    %c0_34 = arith.constant 0 : index
    %34 = vector.load %arg6[%c0_32, %c0_33, %c0_34] : memref<3x1x256xf32, #tpu.memory_space<vmem>>, vector<1x1x256xf32>
    %35 = vector.shape_cast %34 : vector<1x1x256xf32> to vector<1x256xf32>
    %36 = vector.broadcast %35 : vector<1x256xf32> to vector<16x256xf32>
    %37 = arith.addf %33, %36 : vector<16x256xf32>
    %38 = vector.extract_strided_slice %37 {offsets = [0, 0], sizes = [16, 128], strides = [1, 1]} : vector<16x256xf32> to vector<16x128xf32>
    %39 = math.tanh %38 : vector<16x128xf32>
    %40 = vector.extract_strided_slice %37 {offsets = [0, 128], sizes = [16, 128], strides = [1, 1]} : vector<16x256xf32> to vector<16x128xf32>
    %41 = arith.negf %40 : vector<16x128xf32>
    %42 = math.exp %41 : vector<16x128xf32>
    %cst_35 = arith.constant 1.000000e+00 : f32
    %43 = vector.broadcast %cst_35 : f32 to vector<16x128xf32>
    %44 = arith.addf %43, %42 : vector<16x128xf32>
    %45 = arith.divf %43, %44 : vector<16x128xf32>
    %46 = arith.mulf %39, %45 : vector<16x128xf32>
    %c0_36 = arith.constant 0 : index
    %c0_37 = arith.constant 0 : index
    %c0_38 = arith.constant 0 : index
    %47 = vector.load %arg7[%c0_36, %c0_37, %c0_38] : memref<3x128x256xf32, #tpu.memory_space<vmem>>, vector<1x128x256xf32>
    %48 = vector.shape_cast %47 : vector<1x128x256xf32> to vector<128x256xf32>
    %cst_39 = arith.constant dense<0.000000e+00> : vector<16x256xf32>
    %49 = tpu.matmul %46, %48, %cst_39 {dimension_numbers = #tpu.dot_dimension_numbers<[1], [0], [0], [1], [0, 0, 1, 1], [], []>} : vector<16x128xf32>, vector<128x256xf32>, vector<16x256xf32> -> vector<16x256xf32>
    %c0_40 = arith.constant 0 : index
    %c0_41 = arith.constant 0 : index
    %c0_42 = arith.constant 0 : index
    %50 = vector.load %arg8[%c0_40, %c0_41, %c0_42] : memref<3x1x256xf32, #tpu.memory_space<vmem>>, vector<1x1x256xf32>
    %51 = vector.shape_cast %50 : vector<1x1x256xf32> to vector<1x256xf32>
    %52 = vector.broadcast %51 : vector<1x256xf32> to vector<16x256xf32>
    %53 = arith.addf %49, %52 : vector<16x256xf32>
    %54 = vector.extract_strided_slice %53 {offsets = [0, 0], sizes = [16, 128], strides = [1, 1]} : vector<16x256xf32> to vector<16x128xf32>
    %55 = arith.addf %14, %54 : vector<16x128xf32>
    %c0_43 = arith.constant 0 : index
    %c0_44 = arith.constant 0 : index
    %56 = vector.load %arg11[%c0_43, %c0_44] : memref<16x128xf32, #tpu.memory_space<vmem>>, vector<16x128xf32>
    %57 = arith.mulf %55, %56 : vector<16x128xf32>
    %c8_45 = arith.constant 8 : index
    %c0_46 = arith.constant 0 : index
    %58 = vector.load %arg10[%c8_45, %c0_46] : memref<32x128xf32, #tpu.memory_space<vmem>>, vector<16x128xf32>
    tpu.vector_store %arg10[%c8_45, %c0_46], %57 {strides = array<i32>} : memref<32x128xf32, #tpu.memory_space<vmem>>, vector<16x128xf32>,
    %59 = vector.extract_strided_slice %53 {offsets = [0, 128], sizes = [16, 128], strides = [1, 1]} : vector<16x256xf32> to vector<16x128xf32>
    %c0_47 = arith.constant 0 : index
    %c0_48 = arith.constant 0 : index
    %60 = vector.load %arg12[%c0_47, %c0_48] : memref<16x128xf32, #tpu.memory_space<vmem>>, vector<16x128xf32>
    tpu.vector_store %arg12[%c0_47, %c0_48], %59 {strides = array<i32>} : memref<16x128xf32, #tpu.memory_space<vmem>>, vector<16x128xf32>,
    %c8_49 = arith.constant 8 : index
    %c0_50 = arith.constant 0 : index
    %61 = vector.load %arg10[%c8_49, %c0_50] : memref<32x128xf32, #tpu.memory_space<vmem>>, vector<16x128xf32>
    %c1_51 = arith.constant 1 : index
    %c1_52 = arith.constant 1 : index
    %c0_53 = arith.constant 0 : index
    %c0_54 = arith.constant 0 : index
    %62 = vector.load %arg5[%c1_51, %c1_52, %c0_53, %c0_54] : memref<3x3x128x256xf32, #tpu.memory_space<vmem>>, vector<1x1x128x256xf32>
    %63 = vector.shape_cast %62 : vector<1x1x128x256xf32> to vector<128x256xf32>
    %cst_55 = arith.constant dense<0.000000e+00> : vector<16x256xf32>
    %64 = tpu.matmul %61, %63, %cst_55 {dimension_numbers = #tpu.dot_dimension_numbers<[1], [0], [0], [1], [0, 0, 1, 1], [], []>} : vector<16x128xf32>, vector<128x256xf32>, vector<16x256xf32> -> vector<16x256xf32>
    %c6 = arith.constant 6 : index
    %c0_56 = arith.constant 0 : index
    %65 = vector.load %arg10[%c6, %c0_56] : memref<32x128xf32, #tpu.memory_space<vmem>>, vector<16x128xf32>
    %c1_57 = arith.constant 1 : index
    %c0_58 = arith.constant 0 : index
    %c0_59 = arith.constant 0 : index
    %c0_60 = arith.constant 0 : index
    %66 = vector.load %arg5[%c1_57, %c0_58, %c0_59, %c0_60] : memref<3x3x128x256xf32, #tpu.memory_space<vmem>>, vector<1x1x128x256xf32>
    %67 = vector.shape_cast %66 : vector<1x1x128x256xf32> to vector<128x256xf32>
    %cst_61 = arith.constant dense<0.000000e+00> : vector<16x256xf32>
    %68 = tpu.matmul %65, %67, %cst_61 {dimension_numbers = #tpu.dot_dimension_numbers<[1], [0], [0], [1], [0, 0, 1, 1], [], []>} : vector<16x128xf32>, vector<128x256xf32>, vector<16x256xf32> -> vector<16x256xf32>
    %69 = arith.addf %64, %68 : vector<16x256xf32>
    %c10 = arith.constant 10 : index
    %c0_62 = arith.constant 0 : index
    %70 = vector.load %arg10[%c10, %c0_62] : memref<32x128xf32, #tpu.memory_space<vmem>>, vector<16x128xf32>
    %c1_63 = arith.constant 1 : index
    %c2_64 = arith.constant 2 : index
    %c0_65 = arith.constant 0 : index
    %c0_66 = arith.constant 0 : index
    %71 = vector.load %arg5[%c1_63, %c2_64, %c0_65, %c0_66] : memref<3x3x128x256xf32, #tpu.memory_space<vmem>>, vector<1x1x128x256xf32>
    %72 = vector.shape_cast %71 : vector<1x1x128x256xf32> to vector<128x256xf32>
    %cst_67 = arith.constant dense<0.000000e+00> : vector<16x256xf32>
    %73 = tpu.matmul %70, %72, %cst_67 {dimension_numbers = #tpu.dot_dimension_numbers<[1], [0], [0], [1], [0, 0, 1, 1], [], []>} : vector<16x128xf32>, vector<128x256xf32>, vector<16x256xf32> -> vector<16x256xf32>
    %74 = arith.addf %69, %73 : vector<16x256xf32>
    %c0_68 = arith.constant 0 : index
    %c0_69 = arith.constant 0 : index
    %c0_70 = arith.constant 0 : index
    %75 = vector.load %arg3[%c0_68, %c0_69, %c0_70] : memref<1x16x128xf32, #tpu.memory_space<vmem>>, vector<1x16x128xf32>
    %76 = vector.shape_cast %75 : vector<1x16x128xf32> to vector<16x128xf32>
    %c1_71 = arith.constant 1 : index
    %c0_72 = arith.constant 0 : index
    %c0_73 = arith.constant 0 : index
    %77 = vector.load %arg4[%c1_71, %c0_72, %c0_73] : memref<3x128x256xf32, #tpu.memory_space<vmem>>, vector<1x128x256xf32>
    %78 = vector.shape_cast %77 : vector<1x128x256xf32> to vector<128x256xf32>
    %cst_74 = arith.constant dense<0.000000e+00> : vector<16x256xf32>
    %79 = tpu.matmul %76, %78, %cst_74 {dimension_numbers = #tpu.dot_dimension_numbers<[1], [0], [0], [1], [0, 0, 1, 1], [], []>} : vector<16x128xf32>, vector<128x256xf32>, vector<16x256xf32> -> vector<16x256xf32>
    %80 = arith.addf %74, %79 : vector<16x256xf32>
    %c1_75 = arith.constant 1 : index
    %c0_76 = arith.constant 0 : index
    %c0_77 = arith.constant 0 : index
    %81 = vector.load %arg6[%c1_75, %c0_76, %c0_77] : memref<3x1x256xf32, #tpu.memory_space<vmem>>, vector<1x1x256xf32>
    %82 = vector.shape_cast %81 : vector<1x1x256xf32> to vector<1x256xf32>
    %83 = vector.broadcast %82 : vector<1x256xf32> to vector<16x256xf32>
    %84 = arith.addf %80, %83 : vector<16x256xf32>
    %85 = vector.extract_strided_slice %84 {offsets = [0, 0], sizes = [16, 128], strides = [1, 1]} : vector<16x256xf32> to vector<16x128xf32>
    %86 = math.tanh %85 : vector<16x128xf32>
    %87 = vector.extract_strided_slice %84 {offsets = [0, 128], sizes = [16, 128], strides = [1, 1]} : vector<16x256xf32> to vector<16x128xf32>
    %88 = arith.negf %87 : vector<16x128xf32>
    %89 = math.exp %88 : vector<16x128xf32>
    %cst_78 = arith.constant 1.000000e+00 : f32
    %90 = vector.broadcast %cst_78 : f32 to vector<16x128xf32>
    %91 = arith.addf %90, %89 : vector<16x128xf32>
    %92 = arith.divf %90, %91 : vector<16x128xf32>
    %93 = arith.mulf %86, %92 : vector<16x128xf32>
    %c1_79 = arith.constant 1 : index
    %c0_80 = arith.constant 0 : index
    %c0_81 = arith.constant 0 : index
    %94 = vector.load %arg7[%c1_79, %c0_80, %c0_81] : memref<3x128x256xf32, #tpu.memory_space<vmem>>, vector<1x128x256xf32>
    %95 = vector.shape_cast %94 : vector<1x128x256xf32> to vector<128x256xf32>
    %cst_82 = arith.constant dense<0.000000e+00> : vector<16x256xf32>
    %96 = tpu.matmul %93, %95, %cst_82 {dimension_numbers = #tpu.dot_dimension_numbers<[1], [0], [0], [1], [0, 0, 1, 1], [], []>} : vector<16x128xf32>, vector<128x256xf32>, vector<16x256xf32> -> vector<16x256xf32>
    %c1_83 = arith.constant 1 : index
    %c0_84 = arith.constant 0 : index
    %c0_85 = arith.constant 0 : index
    %97 = vector.load %arg8[%c1_83, %c0_84, %c0_85] : memref<3x1x256xf32, #tpu.memory_space<vmem>>, vector<1x1x256xf32>
    %98 = vector.shape_cast %97 : vector<1x1x256xf32> to vector<1x256xf32>
    %99 = vector.broadcast %98 : vector<1x256xf32> to vector<16x256xf32>
    %100 = arith.addf %96, %99 : vector<16x256xf32>
    %101 = vector.extract_strided_slice %100 {offsets = [0, 0], sizes = [16, 128], strides = [1, 1]} : vector<16x256xf32> to vector<16x128xf32>
    %102 = arith.addf %61, %101 : vector<16x128xf32>
    %c0_86 = arith.constant 0 : index
    %c0_87 = arith.constant 0 : index
    %103 = vector.load %arg11[%c0_86, %c0_87] : memref<16x128xf32, #tpu.memory_space<vmem>>, vector<16x128xf32>
    %104 = arith.mulf %102, %103 : vector<16x128xf32>
    %c8_88 = arith.constant 8 : index
    %c0_89 = arith.constant 0 : index
    %105 = vector.load %arg10[%c8_88, %c0_89] : memref<32x128xf32, #tpu.memory_space<vmem>>, vector<16x128xf32>
    tpu.vector_store %arg10[%c8_88, %c0_89], %104 {strides = array<i32>} : memref<32x128xf32, #tpu.memory_space<vmem>>, vector<16x128xf32>,
    %c0_90 = arith.constant 0 : index
    %c0_91 = arith.constant 0 : index
    %106 = vector.load %arg12[%c0_90, %c0_91] : memref<16x128xf32, #tpu.memory_space<vmem>>, vector<16x128xf32>
    %107 = vector.extract_strided_slice %100 {offsets = [0, 128], sizes = [16, 128], strides = [1, 1]} : vector<16x256xf32> to vector<16x128xf32>
    %108 = arith.addf %106, %107 : vector<16x128xf32>
    %c0_92 = arith.constant 0 : index
    %c0_93 = arith.constant 0 : index
    %109 = vector.load %arg12[%c0_92, %c0_93] : memref<16x128xf32, #tpu.memory_space<vmem>>, vector<16x128xf32>
    tpu.vector_store %arg12[%c0_92, %c0_93], %108 {strides = array<i32>} : memref<16x128xf32, #tpu.memory_space<vmem>>, vector<16x128xf32>,
    %c8_94 = arith.constant 8 : index
    %c0_95 = arith.constant 0 : index
    %110 = vector.load %arg10[%c8_94, %c0_95] : memref<32x128xf32, #tpu.memory_space<vmem>>, vector<16x128xf32>
    %c2_96 = arith.constant 2 : index
    %c1_97 = arith.constant 1 : index
    %c0_98 = arith.constant 0 : index
    %c0_99 = arith.constant 0 : index
    %111 = vector.load %arg5[%c2_96, %c1_97, %c0_98, %c0_99] : memref<3x3x128x256xf32, #tpu.memory_space<vmem>>, vector<1x1x128x256xf32>
    %112 = vector.shape_cast %111 : vector<1x1x128x256xf32> to vector<128x256xf32>
    %cst_100 = arith.constant dense<0.000000e+00> : vector<16x256xf32>
    %113 = tpu.matmul %110, %112, %cst_100 {dimension_numbers = #tpu.dot_dimension_numbers<[1], [0], [0], [1], [0, 0, 1, 1], [], []>} : vector<16x128xf32>, vector<128x256xf32>, vector<16x256xf32> -> vector<16x256xf32>
    %c4 = arith.constant 4 : index
    %c0_101 = arith.constant 0 : index
    %114 = vector.load %arg10[%c4, %c0_101] : memref<32x128xf32, #tpu.memory_space<vmem>>, vector<16x128xf32>
    %c2_102 = arith.constant 2 : index
    %c0_103 = arith.constant 0 : index
    %c0_104 = arith.constant 0 : index
    %c0_105 = arith.constant 0 : index
    %115 = vector.load %arg5[%c2_102, %c0_103, %c0_104, %c0_105] : memref<3x3x128x256xf32, #tpu.memory_space<vmem>>, vector<1x1x128x256xf32>
    %116 = vector.shape_cast %115 : vector<1x1x128x256xf32> to vector<128x256xf32>
    %cst_106 = arith.constant dense<0.000000e+00> : vector<16x256xf32>
    %117 = tpu.matmul %114, %116, %cst_106 {dimension_numbers = #tpu.dot_dimension_numbers<[1], [0], [0], [1], [0, 0, 1, 1], [], []>} : vector<16x128xf32>, vector<128x256xf32>, vector<16x256xf32> -> vector<16x256xf32>
    %118 = arith.addf %113, %117 : vector<16x256xf32>
    %c12 = arith.constant 12 : index
    %c0_107 = arith.constant 0 : index
    %119 = vector.load %arg10[%c12, %c0_107] : memref<32x128xf32, #tpu.memory_space<vmem>>, vector<16x128xf32>
    %c2_108 = arith.constant 2 : index
    %c2_109 = arith.constant 2 : index
    %c0_110 = arith.constant 0 : index
    %c0_111 = arith.constant 0 : index
    %120 = vector.load %arg5[%c2_108, %c2_109, %c0_110, %c0_111] : memref<3x3x128x256xf32, #tpu.memory_space<vmem>>, vector<1x1x128x256xf32>
    %121 = vector.shape_cast %120 : vector<1x1x128x256xf32> to vector<128x256xf32>
    %cst_112 = arith.constant dense<0.000000e+00> : vector<16x256xf32>
    %122 = tpu.matmul %119, %121, %cst_112 {dimension_numbers = #tpu.dot_dimension_numbers<[1], [0], [0], [1], [0, 0, 1, 1], [], []>} : vector<16x128xf32>, vector<128x256xf32>, vector<16x256xf32> -> vector<16x256xf32>
    %123 = arith.addf %118, %122 : vector<16x256xf32>
    %c0_113 = arith.constant 0 : index
    %c0_114 = arith.constant 0 : index
    %c0_115 = arith.constant 0 : index
    %124 = vector.load %arg3[%c0_113, %c0_114, %c0_115] : memref<1x16x128xf32, #tpu.memory_space<vmem>>, vector<1x16x128xf32>
    %125 = vector.shape_cast %124 : vector<1x16x128xf32> to vector<16x128xf32>
    %c2_116 = arith.constant 2 : index
    %c0_117 = arith.constant 0 : index
    %c0_118 = arith.constant 0 : index
    %126 = vector.load %arg4[%c2_116, %c0_117, %c0_118] : memref<3x128x256xf32, #tpu.memory_space<vmem>>, vector<1x128x256xf32>
    %127 = vector.shape_cast %126 : vector<1x128x256xf32> to vector<128x256xf32>
    %cst_119 = arith.constant dense<0.000000e+00> : vector<16x256xf32>
    %128 = tpu.matmul %125, %127, %cst_119 {dimension_numbers = #tpu.dot_dimension_numbers<[1], [0], [0], [1], [0, 0, 1, 1], [], []>} : vector<16x128xf32>, vector<128x256xf32>, vector<16x256xf32> -> vector<16x256xf32>
    %129 = arith.addf %123, %128 : vector<16x256xf32>
    %c2_120 = arith.constant 2 : index
    %c0_121 = arith.constant 0 : index
    %c0_122 = arith.constant 0 : index
    %130 = vector.load %arg6[%c2_120, %c0_121, %c0_122] : memref<3x1x256xf32, #tpu.memory_space<vmem>>, vector<1x1x256xf32>
    %131 = vector.shape_cast %130 : vector<1x1x256xf32> to vector<1x256xf32>
    %132 = vector.broadcast %131 : vector<1x256xf32> to vector<16x256xf32>
    %133 = arith.addf %129, %132 : vector<16x256xf32>
    %134 = vector.extract_strided_slice %133 {offsets = [0, 0], sizes = [16, 128], strides = [1, 1]} : vector<16x256xf32> to vector<16x128xf32>
    %135 = math.tanh %134 : vector<16x128xf32>
    %136 = vector.extract_strided_slice %133 {offsets = [0, 128], sizes = [16, 128], strides = [1, 1]} : vector<16x256xf32> to vector<16x128xf32>
    %137 = arith.negf %136 : vector<16x128xf32>
    %138 = math.exp %137 : vector<16x128xf32>
    %cst_123 = arith.constant 1.000000e+00 : f32
    %139 = vector.broadcast %cst_123 : f32 to vector<16x128xf32>
    %140 = arith.addf %139, %138 : vector<16x128xf32>
    %141 = arith.divf %139, %140 : vector<16x128xf32>
    %142 = arith.mulf %135, %141 : vector<16x128xf32>
    %c2_124 = arith.constant 2 : index
    %c0_125 = arith.constant 0 : index
    %c0_126 = arith.constant 0 : index
    %143 = vector.load %arg7[%c2_124, %c0_125, %c0_126] : memref<3x128x256xf32, #tpu.memory_space<vmem>>, vector<1x128x256xf32>
    %144 = vector.shape_cast %143 : vector<1x128x256xf32> to vector<128x256xf32>
    %cst_127 = arith.constant dense<0.000000e+00> : vector<16x256xf32>
    %145 = tpu.matmul %142, %144, %cst_127 {dimension_numbers = #tpu.dot_dimension_numbers<[1], [0], [0], [1], [0, 0, 1, 1], [], []>} : vector<16x128xf32>, vector<128x256xf32>, vector<16x256xf32> -> vector<16x256xf32>
    %c2_128 = arith.constant 2 : index
    %c0_129 = arith.constant 0 : index
    %c0_130 = arith.constant 0 : index
    %146 = vector.load %arg8[%c2_128, %c0_129, %c0_130] : memref<3x1x256xf32, #tpu.memory_space<vmem>>, vector<1x1x256xf32>
    %147 = vector.shape_cast %146 : vector<1x1x256xf32> to vector<1x256xf32>
    %148 = vector.broadcast %147 : vector<1x256xf32> to vector<16x256xf32>
    %149 = arith.addf %145, %148 : vector<16x256xf32>
    %c0_131 = arith.constant 0 : index
    %c0_132 = arith.constant 0 : index
    %150 = vector.load %arg12[%c0_131, %c0_132] : memref<16x128xf32, #tpu.memory_space<vmem>>, vector<16x128xf32>
    %151 = vector.extract_strided_slice %149 {offsets = [0, 128], sizes = [16, 128], strides = [1, 1]} : vector<16x256xf32> to vector<16x128xf32>
    %152 = arith.addf %150, %151 : vector<16x128xf32>
    %c0_133 = arith.constant 0 : index
    %c0_134 = arith.constant 0 : index
    %153 = vector.load %arg12[%c0_133, %c0_134] : memref<16x128xf32, #tpu.memory_space<vmem>>, vector<16x128xf32>
    tpu.vector_store %arg12[%c0_133, %c0_134], %152 {strides = array<i32>} : memref<16x128xf32, #tpu.memory_space<vmem>>, vector<16x128xf32>,
    %c0_135 = arith.constant 0 : index
    %c0_136 = arith.constant 0 : index
    %154 = vector.load %arg12[%c0_135, %c0_136] : memref<16x128xf32, #tpu.memory_space<vmem>>, vector<16x128xf32>
    %c0_137 = arith.constant 0 : index
    %c0_138 = arith.constant 0 : index
    %155 = vector.load %arg11[%c0_137, %c0_138] : memref<16x128xf32, #tpu.memory_space<vmem>>, vector<16x128xf32>
    %156 = arith.mulf %154, %155 : vector<16x128xf32>
    %c0_139 = arith.constant 0 : index
    %c0_140 = arith.constant 0 : index
    %c0_141 = arith.constant 0 : index
    %157 = vector.load %arg9[%c0_139, %c0_140, %c0_141] : memref<1x16x128xf32, #tpu.memory_space<vmem>>, vector<1x16x128xf32>
    %158 = vector.shape_cast %157 : vector<1x16x128xf32> to vector<16x128xf32>
    %159 = vector.shape_cast %156 : vector<16x128xf32> to vector<1x16x128xf32>
    tpu.vector_store %arg9[%c0_139, %c0_140, %c0_141], %159 {strides = array<i32>} : memref<1x16x128xf32, #tpu.memory_space<vmem>>, vector<1x16x128xf32>,
    return
  }
  func.func @transform_0(%arg0: i32, %arg1: memref<2xi32, #tpu.memory_space<smem>>) -> (i32, i32, i32) {
    %c0_i32 = arith.constant 0 : i32
    %c0_i32_0 = arith.constant 0 : i32
    %c0_i32_1 = arith.constant 0 : i32
    return %arg0, %c0_i32, %c0_i32_0 : i32, i32, i32
  }
  func.func @transform_1(%arg0: i32, %arg1: memref<2xi32, #tpu.memory_space<smem>>) -> (i32, i32, i32) {
    %c0_i32 = arith.constant 0 : i32
    %c0_i32_0 = arith.constant 0 : i32
    %c0_i32_1 = arith.constant 0 : i32
    return %arg0, %c0_i32, %c0_i32_0 : i32, i32, i32
  }
  func.func @transform_2(%arg0: i32, %arg1: memref<2xi32, #tpu.memory_space<smem>>) -> (i32, i32, i32) {
    %c0_i32 = arith.constant 0 : i32
    %c0_i32_0 = arith.constant 0 : i32
    %c0_i32_1 = arith.constant 0 : i32
    %c0_i32_2 = arith.constant 0 : i32
    return %c0_i32, %c0_i32_0, %c0_i32_1 : i32, i32, i32
  }
  func.func @transform_3(%arg0: i32, %arg1: memref<2xi32, #tpu.memory_space<smem>>) -> (i32, i32, i32, i32) {
    %c0_i32 = arith.constant 0 : i32
    %c0_i32_0 = arith.constant 0 : i32
    %c0_i32_1 = arith.constant 0 : i32
    %c0_i32_2 = arith.constant 0 : i32
    %c0_i32_3 = arith.constant 0 : i32
    return %c0_i32, %c0_i32_0, %c0_i32_1, %c0_i32_2 : i32, i32, i32, i32
  }
  func.func @transform_4(%arg0: i32, %arg1: memref<2xi32, #tpu.memory_space<smem>>) -> (i32, i32, i32) {
    %c0_i32 = arith.constant 0 : i32
    %c0_i32_0 = arith.constant 0 : i32
    %c0_i32_1 = arith.constant 0 : i32
    %c0_i32_2 = arith.constant 0 : i32
    return %c0_i32, %c0_i32_0, %c0_i32_1 : i32, i32, i32
  }
  func.func @transform_5(%arg0: i32, %arg1: memref<2xi32, #tpu.memory_space<smem>>) -> (i32, i32, i32) {
    %c0_i32 = arith.constant 0 : i32
    %c0_i32_0 = arith.constant 0 : i32
    %c0_i32_1 = arith.constant 0 : i32
    %c0_i32_2 = arith.constant 0 : i32
    return %c0_i32, %c0_i32_0, %c0_i32_1 : i32, i32, i32
  }
  func.func @transform_6(%arg0: i32, %arg1: memref<2xi32, #tpu.memory_space<smem>>) -> (i32, i32, i32) {
    %c0_i32 = arith.constant 0 : i32
    %c0_i32_0 = arith.constant 0 : i32
    %c0_i32_1 = arith.constant 0 : i32
    %c0_i32_2 = arith.constant 0 : i32
    return %c0_i32, %c0_i32_0, %c0_i32_1 : i32, i32, i32
  }
  func.func @transform_7(%arg0: i32, %arg1: memref<2xi32, #tpu.memory_space<smem>>) -> (i32, i32, i32) {
    %c0_i32 = arith.constant 0 : i32
    %c0_i32_0 = arith.constant 0 : i32
    %c0_i32_1 = arith.constant 0 : i32
    return %arg0, %c0_i32, %c0_i32_0 : i32, i32, i32
  }
}

</mosaic_0001>

<bundles_post_ra>
// kernel: tpu_custom_call.1
= control target key start
LH: loop header
LB: loop body
LE: loop exit
PB: predicated region body
PF: predicated region fallthrough
CT: control target
= control target key end

     0   :  { %s2529_s30 = smov [#allocation6]   ;;  %s2958_s0 = inlined_call_operand.hbm [shape: s32[2], index: 0, kind: input, shape index: {}]   ;;  %s2959_s1 = inlined_call_operand.hbm [shape: f32[2,16,128], index: 1, kind: input, shape index: {}]   ;;  %s2960_s2 = inlined_call_operand.hbm [shape: f32[2,16,128], index: 2, kind: input, shape index: {}]   ;;  %s2961_s3 = inlined_call_operand.hbm [shape: f32[3,128,256], index: 3, kind: input, shape index: {}]   ;;  %s2962_s4 = inlined_call_operand.hbm [shape: f32[3,3,128,256], index: 4, kind: input, shape index: {}]   ;;  %s2963_s5 = inlined_call_operand.hbm [shape: f32[3,1,256], index: 5, kind: input, shape index: {}]   ;;  %s2964_s6 = inlined_call_operand.hbm [shape: f32[3,128,256], index: 6, kind: input, shape index: {}]   ;;  %s2965_s7 = inlined_call_operand.hbm [shape: f32[3,1,256], index: 7, kind: input, shape index: {}]   ;;  %s2966_s8 = inlined_call_operand.hbm [shape: f32[2,16,128], index: 8, kind: output, shape index: {}]  }
   0x1   :  { %2967 = sst [smem:[#allocation27_spill]] %s2959_s1  ;;  %s14_s29 = sshll.u32 %s2958_s0, 4  ;;  %s15_s29 = int_to_ptr.hbm [resolvable:$true] %s14_s29 }
   0x2   :  { %2968 = sst [smem:[#allocation28_spill]] %s2961_s3 }
   0x3   :  { %2969 = sst [smem:[#allocation29_spill]] %s2962_s4 }
   0x4   :  { %2970 = sst [smem:[#allocation30_spill]] %s2963_s5 }
   0x5   :  { %2971 = sst [smem:[#allocation31_spill]] %s2964_s6 }
   0x6   :  { %2972 = sst [smem:[#allocation32_spill]] %s2965_s7 }
   0x7   :  { %17 = dma.hbm_to_smem %s15_s29, 16, %s2529_s30, [#allocation5] }
   0x8   :  { %2487 = dma.done.wait [#allocation5], 16 }
   0x9   :  { %2488 = vsyncadd [#allocation5], 4294967280 }
   0xa   :  { %20 = sfence }
   0xb   :  { %21 = vsyncpa [#allocation8], 0 }
   0xc   :  { %23 = vsyncpa [#allocation8 + $0x1], 0 }
   0xd   :  { %24 = vsyncpa [#allocation11], 0 }
   0xe   :  { %26 = vsyncpa [#allocation11 + $0x1], 0 }
   0xf   :  { %27 = vsyncpa [#allocation14], 0 }
  0x10   :  { %28 = vsyncpa [#allocation17], 0 }
  0x11   :  { %29 = vsyncpa [#allocation9], 0 }
  0x12   :  { %31 = vsyncpa [#allocation9 + $0x1], 0  ;;  %s2592_s9 = smov 0   ;;  %s2594_s10 = smov 0  }
  0x13   :  { %s2596_s11 = smov 0   ;;  %s2598_s0 = smov 0  }
  0x14 LB: > { %s2973_s3 = sld [smem:[#allocation28_spill]]  ;;  %s2616_s15 = sadd.s32 4294967295, %s2527_s0   ;;  %s2527_s0 = sphi %s2598_s0, %s2990_s0   ;;  %s2523_s11 = sphi %s2596_s11, %s2989_s11   ;;  %s2519_s10 = sphi %s2594_s10, %s2988_s10   ;;  %s2515_s9 = sphi %s2592_s9, %s2987_s9  }
  0x15   : > { %p2016_p0 = scmp.ge.s32.totalorder %s2527_s0, 1  ;;  %p58_p1 = scmp.eq.s32.totalorder %s2616_s15, 0 }
  0x16   : > { %p225_p2 = scmp.lt.s32.totalorder %s2527_s0, 3  ;;  %s2530_s17 = smov [#allocation12]  }
  0x17   : > { %s238_s18 = sshll.u32 %s2530_s17, 4  ;;  %s2975_s4 = sld [smem:[#allocation29_spill]]  ;;  %s239_s18 = int_to_ptr.vmem [resolvable:$true] %s238_s18 }
  0x18   : > { %p2621_p3 = pnand %p2016_p0, %p225_p2  ;;  %s2977_s6 = sld [smem:[#allocation31_spill]] }
  0x19   : > { %s2531_s26 = smov [#allocation13]   ;;  %s2532_s28 = smov 256  }
  0x1a   : > { %s236_s14 = sshll.u32 %s2973_s3, 4  ;;  %p2096_p4 = pneg %p2621_p3  ;;  %s237_s14 = int_to_ptr.hbm [resolvable:$true] %s236_s14 }
  0x1b   : > { %s252_s27 = sshll.u32 %s2531_s26, 4  ;;  %s2533_s29 = smov 16   ;;  %s253_s27 = int_to_ptr.vmem [resolvable:$true] %s252_s27 }
  0x1c   : > { %p2633_p6 = pnand %p2096_p4, %p58_p1  ;;  %s2978_s5 = sld [smem:[#allocation30_spill]] }
  0x1d   : > { %s250_s21 = sshll.u32 %s2975_s4, 4  ;;  %s2534_s17 = smov [#allocation16]   ;;  %s251_s21 = int_to_ptr.hbm [resolvable:$true] %s250_s21 }
  0x1e   : > { %s278_s25 = sshll.u32 %s2977_s6, 4  ;;  %s280_s19 = sshll.u32 %s2534_s17, 4  ;;  %s279_s25 = int_to_ptr.hbm [resolvable:$true] %s278_s25  ;;  %s281_s19 = int_to_ptr.vmem [resolvable:$true] %s280_s19 }
  0x1f   : > { %2099 = dma.hbm_to_vmem [thread:$0]  (!%p2633_p6), %s237_s14, 12288, %s239_s18, [#allocation11], %s2532_s28, %s2532_s28, %s2533_s29  }
  0x20   : > { %2102 = dma.hbm_to_vmem [thread:$0]  (!%p2633_p6), %s251_s21, 36864, %s253_s27, [#allocation14], %s2532_s28, %s2532_s28, %s2533_s29  }
  0x21   : > { %2108 = dma.hbm_to_vmem [thread:$0]  (!%p2633_p6), %s279_s25, 12288, %s281_s19, [#allocation17], %s2532_s28, %s2532_s28, %s2533_s29  }
  0x22   : > { %s264_s13 = sshll.u32 %s2978_s5, 4  ;;  %s2535_s14 = smov [#allocation15]   ;;  %s265_s13 = int_to_ptr.hbm [resolvable:$true] %s264_s13 }
  0x23   : > { %s266_s18 = sshll.u32 %s2535_s14, 4  ;;  %s2536_s20 = smov 32   ;;  %s267_s18 = int_to_ptr.vmem [resolvable:$true] %s266_s18 }
  0x24   : > { %s2537_s21 = smov 2   ;;  %s2979_s7 = sld [smem:[#allocation32_spill]] }
  0x25   : > { %2105 = dma.hbm_to_vmem [thread:$0]  (!%p2633_p6), %s265_s13, 96, %s267_s18, [#allocation14], %s2536_s20, %s2536_s20, %s2537_s21  }
  0x26   : > { %s2538_s25 = smov [#allocation18]   ;;  %s2015_s28 = sadd.s32 4294967294, %s2527_s0  }
  0x27   : > { %s294_s27 = sshll.u32 %s2538_s25, 4  ;;  %s2658_s29 = sadd.s32 1, %s2527_s0   ;;  %s295_s27 = int_to_ptr.vmem [resolvable:$true] %s294_s27 }
  0x28   : > { %s44_s30 = sadd.s32 1, %s2523_s11  ;;  %s41_s12 = ssub.s32 %s2527_s0, %s2658_s29 }
  0x29   : > { %p51_p7 = scmp.ne.s32.totalorder %s2523_s11, %s2519_s10  ;;  %p42_p8 = scmp.eq.s32.totalorder %s41_s12, 0 }
  0x2a   : > { %s292_s26 = sshll.u32 %s2979_s7, 4  ;;  %p52_p9 = scmp.eq.s32.totalorder %s2527_s0, 0  ;;  %s293_s26 = int_to_ptr.hbm [resolvable:$true] %s292_s26 }
  0x2b   : > { %2111 = dma.hbm_to_vmem [thread:$0]  (!%p2633_p6), %s293_s26, 96, %s295_s27, [#allocation17], %s2536_s20, %s2536_s20, %s2537_s21  }
  0x2c   : > { %p57_p10 = scmp.ne.s32.totalorder %s2519_s10, %s2515_s9  ;;  %p212_p11 = scmp.eq.s32.totalorder %s2616_s15, 1 }
  0x2d   : > { %s2670_s13 = scalar_select %p42_p8, %s2523_s11, %s44_s30  }
  0x2e   : > { %p2672_p12 = por %p52_p9, %p51_p7  ;;  %p2678_p13 = por %p58_p1, %p57_p10 }
  0x2f   : > { %p2682_p0 = por %p212_p11, %p51_p7  ;;  %p218_p2 = scmp.eq.s32.totalorder %s2015_s28, 1 }
  0x30   : > { %p2128_p4 = scmp.lt.s32.totalorder %s2527_s0, 2  ;;  %s308_s14 = sand.u32 1, %s2523_s11  }
  0x31   : > { %p2688_p6 = por %p218_p2, %p57_p10  ;;  %s2692_s20 = sshll.u32 %s308_s14, 4 }
  0x32   : > { %s2051_s21 = sshll.u32 %s2527_s0, 4  ;;  %s2984_s1 = sld [smem:[#allocation27_spill]] }
  0x33   : > { %s312_s27 = scalar_lea.vmem [#allocation7], %s2692_s20  ;;  %p2701_p7 = pnand %p2128_p4, %p2672_p12 }
  0x34   : > { %s320_s30 = sshll.u32 %s312_s27, 4  ;;  %s339_s4 = scalar_lea.hbm %s2960_s2, %s2051_s21  ;;  %s321_s30 = int_to_ptr.vmem [resolvable:$true] %s320_s30 }
  0x35   : > { %s309_s5 = scalar_lea.sflag [#allocation8], %s308_s14  ;;  %p2387_p9 = pneg %p2701_p7 }
  0x38   : > { %s317_s26 = scalar_lea.hbm %s2984_s1, %s2051_s21 }
  0x39   : > { %s318_s25 = sshll.u32 %s317_s26, 4  ;;  %s2390_s26 = scalar_lea.hbm %s2984_s1, 32  ;;  %s319_s25 = int_to_ptr.hbm [resolvable:$true] %s318_s25 }
  0x3a   : > { %s2383_s6 = sshra.s32 %s319_s25, 4  ;;  %s2384_s6 = int_to_ptr.hbm [resolvable:$true] %s2383_s6 }
  0x3b   : > { %s2385_s23 = scalar_lea.hbm %s2384_s6, 16  ;;  %p2391_p12 = scmp.lt.s32.totalorder %s2384_s6, %s2984_s1 }
  0x3c   : > { %p2386_p8 = scmp.ne.s32.totalorder %s2384_s6, %s2385_s23  ;;  %p2392_p2 = scmp.lt.s32.totalorder %s2390_s26, %s2385_s23 }
  0x3e   : > { %p2388_p10 = pnand %p2387_p9, %p2386_p8  ;;  %p2393_p4 = por %p2392_p2, %p2391_p12 }
  0x40   : > { %p2389_p11 = pneg %p2388_p10 }
  0x42   : > { %p2394_p5 = pnand %p2393_p4, %p2389_p11 }
  0x44   : > { %2397 = shalt.err (!%p2394_p5)
}
  0x45   : > { %s2539_s14 = smov 128   ;;  %s2540_s21 = smov 8  }
  0x46   : > { %2115 = dma.hbm_to_vmem [thread:$0]  (!%p2701_p7), %s319_s25, 256, %s321_s30, %s309_s5, %s2539_s14, %s2539_s14, %s2540_s21  }
  0x47   : > { %s340_s12 = sshll.u32 %s339_s4, 4  ;;  %s334_s7 = scalar_lea.vmem [#allocation10], %s2692_s20  ;;  %s341_s12 = int_to_ptr.hbm [resolvable:$true] %s340_s12 }
  0x48   : > { %s342_s17 = sshll.u32 %s334_s7, 4  ;;  %s330_s24 = sand.u32 1, %s2527_s0   ;;  %s343_s17 = int_to_ptr.vmem [resolvable:$true] %s342_s17 }
  0x49   : > { %s331_s27 = scalar_lea.sflag [#allocation11], %s330_s24  ;;  %s2413_s6 = sshra.s32 %s341_s12, 4  ;;  %s2414_s6 = int_to_ptr.hbm [resolvable:$true] %s2413_s6 }
  0x4a   : > { %s2415_s23 = scalar_lea.hbm %s2414_s6, 16  ;;  %s2420_s1 = scalar_lea.hbm %s2960_s2, 32 }
  0x4b   : > { %p2416_p8 = scmp.ne.s32.totalorder %s2414_s6, %s2415_s23  ;;  %p2421_p11 = scmp.lt.s32.totalorder %s2414_s6, %s2960_s2 }
  0x4c   : > { %p2422_p12 = scmp.lt.s32.totalorder %s2420_s1, %s2415_s23 }
  0x4d   : > { %p2418_p5 = pnand %p2416_p8, %p2387_p9 }
  0x4e   : > { %p2423_p2 = por %p2422_p12, %p2421_p11 }
  0x4f   : > { %p2419_p10 = pneg %p2418_p5 }
  0x51   : > { %p2424_p4 = pnand %p2423_p2, %p2419_p10 }
  0x53   : > { %2427 = shalt.err (!%p2424_p4)
}
  0x54   : > { %2118 = dma.hbm_to_vmem [thread:$0]  (!%p2701_p7), %s341_s12, 256, %s343_s17, %s331_s27, %s2539_s14, %s2539_s14, %s2540_s21  }
  0x55   : > { %354 = sbr.rel (%p2621_p3) target bundleno = 1124 (0x464), region = 48  ;;  %s2737_s7 = sand.u32 (!%p2621_p3), 1, %s2519_s10  }
  0x56   : > { %s2740_s20 = sshll.u32 (!%p2621_p3), %s2737_s7, 4  ;;  %s357_s25 = scalar_lea.sflag (!%p2621_p3), [#allocation8], %s2737_s7 }
  0x57   : > { %s360_s1 = scalar_lea.vmem (!%p2621_p3), [#allocation7], %s2740_s20 }
  0x5a   : > { %2490 = dma.done.wait (%p2678_p13), %s357_s25, 256  }
  0x5b   : > { %2492 = vsyncadd (%p2678_p13), %s357_s25, 4294967040  ;;  %s366_s16 = sand.u32 1, %s2616_s15   ;;  %s2750_s28 = scalar_lea.vmem [#allocation10], %s2740_s20 }
  0x5c   : > { %s367_s30 = scalar_lea.sflag [#allocation11], %s366_s16 }
  0x5d   : > { %2494 = dma.done.wait (%p2678_p13), %s367_s30, 256  }
  0x5e   : > { %2496 = vsyncadd (%p2678_p13), %s367_s30, 4294967040 }
  0x5f   : > { %2498 = dma.done.wait (%p58_p1), [#allocation11], 12288  }
  0x60   : > { %2500 = vsyncadd (%p58_p1), [#allocation11], 4294955008 }
  0x61   : > { %2502 = dma.done.wait (%p58_p1), [#allocation14], 36960  }
  0x62   : > { %2504 = vsyncadd (%p58_p1), [#allocation14], 4294930336 }
  0x63   : > { %2506 = dma.done.wait (%p58_p1), [#allocation17], 12384  }
  0x64   : > { %2508 = vsyncadd (%p58_p1), [#allocation17], 4294954912  ;;  %v519_v0 = vld [vmem:[#allocation13 + $0xf8] sm:$0xff]  ;;  %v517_v2 = vld [vmem:[#allocation13 + $0xe8] sm:$0xff]  ;;  %v2541_v17 = vmov 0.0   ;;  %s2824_s22 = sld [smem:[#allocation6 + %s2616_s15]] }
  0x65   : > { %v485_v1 = vld [vmem:[#allocation13 + $0x1f8] sm:$0xff]  ;;  %543 = vmatpush.msra.mxu1 %v519_v0  ;;  %v483_v3 = vld [vmem:[#allocation13 + $0x1e8] sm:$0xff]  ;;  %v484_v6 = vld [vmem:[#allocation13 + $0x1f0] sm:$0xff]  ;;  %445 = vst [vmem:[#allocation2] sm:$0xff] %v2541_v17  ;;  %s2053_s14 = sshll.u32 %s2616_s15, 4  ;;  %s431_s24 = scalar_lea.vmem [#allocation19], %s2740_s20 }
  0x66   : > { %589 = vmatpush.msra.mxu3 %v485_v1  ;;  %v515_v4 = vld [vmem:[#allocation13 + $0xd8] sm:$0xff]  ;;  %v482_v7 = vld [vmem:[#allocation13 + $0x1e0] sm:$0xff]  ;;  %v513_v8 = vld [vmem:[#allocation13 + $0xc8] sm:$0xff]  ;;  %566 = vmatpush.msra.mxu2 %v484_v6  ;;  %446 = vst [vmem:[#allocation2 + $0x18] sm:$0xff] %v2541_v17  ;;  %s1868_s17 = scalar_lea.hbm %s2966_s8, %s2053_s14  ;;  %s1869_s27 = sshll.u32 %s431_s24, 4  ;;  %s1870_s27 = int_to_ptr.vmem [resolvable:$true] %s1869_s27 }
  0x67   : > { %v481_v5 = vld [vmem:[#allocation13 + $0x1d8] sm:$0xff]  ;;  %544 = vmatpush.msra.mxu1 %v517_v2  ;;  %v479_v9 = vld [vmem:[#allocation13 + $0x1c8] sm:$0xff]  ;;  %v518_v10 = vld [vmem:[#allocation13 + $0xf0] sm:$0xff]  ;;  %s1871_s15 = sshll.u32 %s1868_s17, 4  ;;  %s1857_s6 = scalar_lea.sflag [#allocation9], %s2737_s7  ;;  %s1872_s15 = int_to_ptr.hbm [resolvable:$true] %s1871_s15 }
  0x68   : > { %590 = vmatpush.msra.mxu3 %v483_v3  ;;  %v480_v11 = vld [vmem:[#allocation13 + $0x1d0] sm:$0xff]  ;;  %v511_v12 = vld [vmem:[#allocation13 + $0xb8] sm:$0xff]  ;;  %567 = vmatpush.msra.mxu2 %v482_v7  ;;  %v516_v14 = vld [vmem:[#allocation13 + $0xe0] sm:$0xff]  ;;  %s2457_s23 = sshra.s32 %s1872_s15, 4  ;;  %s2463_s4 = scalar_lea.hbm %s2966_s8, 32  ;;  %s2458_s23 = int_to_ptr.hbm [resolvable:$true] %s2457_s23 }
  0x69   : > { %545 = vmatpush.msra.mxu1 %v515_v4  ;;  %v477_v13 = vld [vmem:[#allocation13 + $0x1b8] sm:$0xff]  ;;  %520 = vmatpush.msra.mxu0 %v518_v10  ;;  %v478_v15 = vld [vmem:[#allocation13 + $0x1c0] sm:$0xff]  ;;  %v514_v16 = vld [vmem:[#allocation13 + $0xd0] sm:$0xff]  ;;  %s2459_s26 = scalar_lea.hbm %s2458_s23, 16  ;;  %p2464_p7 = scmp.lt.s32.totalorder %s2458_s23, %s2966_s8 }
  0x6a   : > { %591 = vmatpush.msra.mxu3 %v481_v5  ;;  %v509_v18 = vld [vmem:[#allocation13 + $0xa8] sm:$0xff]  ;;  %568 = vmatpush.msra.mxu2 %v480_v11  ;;  %v476_v20 = vld [vmem:[#allocation13 + $0x1b0] sm:$0xff]  ;;  %v512_v21 = vld [vmem:[#allocation13 + $0xc0] sm:$0xff]  ;;  %p2460_p1 = scmp.ne.s32.totalorder %s2458_s23, %s2459_s26  ;;  %p2465_p9 = scmp.lt.s32.totalorder %s2463_s4, %s2459_s26 }
  0x6b   : > { %546 = vmatpush.msra.mxu1 %v513_v8  ;;  %v475_v19 = vld [vmem:[#allocation13 + $0x1a8] sm:$0xff]  ;;  %521 = vmatpush.msra.mxu0 %v516_v14  ;;  %v507_v22 = vld [vmem:[#allocation13 + $0x98] sm:$0xff]  ;;  %v474_v24 = vld [vmem:[#allocation13 + $0x1a0] sm:$0xff] }
  0x6c   : > { %592 = vmatpush.msra.mxu3 %v479_v9  ;;  %v473_v23 = vld [vmem:[#allocation13 + $0x198] sm:$0xff]  ;;  %569 = vmatpush.msra.mxu2 %v478_v15  ;;  %v510_v25 = vld [vmem:[#allocation13 + $0xb0] sm:$0xff]  ;;  %v505_v26 = vld [vmem:[#allocation13 + $0x88] sm:$0xff]  ;;  %p2461_p3 = pnand %p2460_p1, %p2682_p0  ;;  %p2466_p8 = por %p2465_p9, %p2464_p7 }
  0x6d   : > { %547 = vmatpush.msra.mxu1 %v511_v12  ;;  %522 = vmatpush.msra.mxu0 %v514_v16  ;;  %v471_v27 = vld [vmem:[#allocation13 + $0x188] sm:$0xff]  ;;  %v472_v28 = vld [vmem:[#allocation13 + $0x190] sm:$0xff]  ;;  %v508_v29 = vld [vmem:[#allocation13 + $0xa0] sm:$0xff] }
  0x6e   : > { %593 = vmatpush.msra.mxu3 %v477_v13  ;;  %570 = vmatpush.msra.mxu2 %v476_v20  ;;  %v503_v30 = vld [vmem:[#allocation13 + $0x78] sm:$0xff]  ;;  %v470_v32 = vld [vmem:[#allocation13 + $0x180] sm:$0xff]  ;;  %v506_v33 = vld [vmem:[#allocation13 + $0x90] sm:$0xff]  ;;  %p2462_p13 = pneg %p2461_p3 }
  0x6f   : > { %548 = vmatpush.msra.mxu1 %v509_v18  ;;  %523 = vmatpush.msra.mxu0 %v512_v21  ;;  %v469_v31 = vld [vmem:[#allocation13 + $0x178] sm:$0xff]  ;;  %v501_v34 = vld [vmem:[#allocation13 + $0x68] sm:$0xff]  ;;  %v468_v36 = vld [vmem:[#allocation13 + $0x170] sm:$0xff] }
  0x70   : > { %594 = vmatpush.msra.mxu3 %v475_v19  ;;  %571 = vmatpush.msra.mxu2 %v474_v24  ;;  %v467_v35 = vld [vmem:[#allocation13 + $0x168] sm:$0xff]  ;;  %v504_v37 = vld [vmem:[#allocation13 + $0x80] sm:$0xff]  ;;  %v499_v38 = vld [vmem:[#allocation13 + $0x58] sm:$0xff]  ;;  %p2467_p5 = pnand %p2466_p8, %p2462_p13 }
  0x71   : > { %549 = vmatpush.msra.mxu1 %v507_v22  ;;  %524 = vmatpush.msra.mxu0 %v510_v25  ;;  %v465_v39 = vld [vmem:[#allocation13 + $0x158] sm:$0xff]  ;;  %v466_v40 = vld [vmem:[#allocation13 + $0x160] sm:$0xff]  ;;  %v502_v41 = vld [vmem:[#allocation13 + $0x70] sm:$0xff] }
  0x72   : > { %595 = vmatpush.msra.mxu3 %v473_v23  ;;  %572 = vmatpush.msra.mxu2 %v472_v28  ;;  %v497_v42 = vld [vmem:[#allocation13 + $0x48] sm:$0xff]  ;;  %v464_v44 = vld [vmem:[#allocation13 + $0x150] sm:$0xff]  ;;  %v500_v45 = vld [vmem:[#allocation13 + $0x60] sm:$0xff] }
  0x73   : > { %550 = vmatpush.msra.mxu1 %v505_v26  ;;  %525 = vmatpush.msra.mxu0 %v508_v29  ;;  %v463_v43 = vld [vmem:[#allocation13 + $0x148] sm:$0xff]  ;;  %v495_v46 = vld [vmem:[#allocation13 + $0x38] sm:$0xff]  ;;  %v462_v48 = vld [vmem:[#allocation13 + $0x140] sm:$0xff] }
  0x74   : > { %596 = vmatpush.msra.mxu3 %v471_v27  ;;  %573 = vmatpush.msra.mxu2 %v470_v32  ;;  %v461_v47 = vld [vmem:[#allocation13 + $0x138] sm:$0xff]  ;;  %v498_v49 = vld [vmem:[#allocation13 + $0x50] sm:$0xff]  ;;  %v493_v50 = vld [vmem:[#allocation13 + $0x28] sm:$0xff] }
  0x75   : > { %551 = vmatpush.msra.mxu1 %v503_v30  ;;  %526 = vmatpush.msra.mxu0 %v506_v33  ;;  %v459_v51 = vld [vmem:[#allocation13 + $0x128] sm:$0xff]  ;;  %v460_v52 = vld [vmem:[#allocation13 + $0x130] sm:$0xff]  ;;  %v496_v53 = vld [vmem:[#allocation13 + $0x40] sm:$0xff] }
  0x76   : > { %597 = vmatpush.msra.mxu3 %v469_v31  ;;  %574 = vmatpush.msra.mxu2 %v468_v36  ;;  %v491_v54 = vld [vmem:[#allocation13 + $0x18] sm:$0xff]  ;;  %v458_v56 = vld [vmem:[#allocation13 + $0x120] sm:$0xff]  ;;  %v494_v57 = vld [vmem:[#allocation13 + $0x30] sm:$0xff] }
  0x77   : > { %552 = vmatpush.msra.mxu1 %v501_v34  ;;  %527 = vmatpush.msra.mxu0 %v504_v37  ;;  %v457_v55 = vld [vmem:[#allocation13 + $0x118] sm:$0xff]  ;;  %v2770_v58 = vld [vmem:[%s360_s1] sm:$0xff]  ;;  %v489_v59 = vld [vmem:[#allocation13 + $0x8] sm:$0xff] }
  0x78   : > { %598 = vmatpush.msra.mxu3 %v467_v35  ;;  %575 = vmatpush.msra.mxu2 %v466_v40  ;;  %v455_v60 = vld [vmem:[#allocation13 + $0x108] sm:$0xff]  ;;  %449 = vst [vmem:[#allocation2 + $0x8] sm:$0xff] %v2770_v58  ;;  %v646_v61 = vld [vmem:[#allocation13 + $0x2f8] sm:$0xff]  ;;  %v456_v63 = vld [vmem:[#allocation13 + $0x110] sm:$0xff] }
  0x79   : > { %553 = vmatpush.msra.mxu1 %v499_v38  ;;  %528 = vmatpush.msra.mxu0 %v502_v41  ;;  %v730_v62 = vld [vmem:[#allocation12 + $0xf8] sm:$0xff]  ;;  %v492_v0 = vld [vmem:[#allocation13 + $0x20] sm:$0xff]  ;;  %v644_v1 = vld [vmem:[#allocation13 + $0x2e8] sm:$0xff] }
  0x7a   : > { %599 = vmatpush.msra.mxu3 %v465_v39  ;;  %576 = vmatpush.msra.mxu2 %v464_v44  ;;  %v728_v2 = vld [vmem:[#allocation12 + $0xe8] sm:$0xff]  ;;  %v454_v3 = vld [vmem:[#allocation13 + $0x100] sm:$0xff]  ;;  %v490_v4 = vld [vmem:[#allocation13 + $0x10] sm:$0xff] }
  0x7b   : > { %554 = vmatpush.msra.mxu1 %v497_v42  ;;  %529 = vmatpush.msra.mxu0 %v500_v45  ;;  %v642_v5 = vld [vmem:[#allocation13 + $0x2d8] sm:$0xff]  ;;  %v729_v8 = vld [vmem:[#allocation12 + $0xf0] sm:$0xff]  ;;  %v488_v9 = vld [vmem:[#allocation13] sm:$0xff] }
  0x7c   : > { %600 = vmatpush.msra.mxu3 %v463_v43  ;;  %577 = vmatpush.msra.mxu2 %v462_v48  ;;  %v726_v6 = vld [vmem:[#allocation12 + $0xd8] sm:$0xff]  ;;  %v640_v10 = vld [vmem:[#allocation13 + $0x2c8] sm:$0xff]  ;;  %v727_v12 = vld [vmem:[#allocation12 + $0xe0] sm:$0xff] }
  0x7d   : > { %555 = vmatpush.msra.mxu1 %v495_v46  ;;  %530 = vmatpush.msra.mxu0 %v498_v49  ;;  %v2775_v7 = vld [vmem:[%s360_s1 + $0x8] sm:$0xff]  ;;  %v645_v13 = vld [vmem:[#allocation13 + $0x2f0] sm:$0xff]  ;;  %v643_v19 = vld [vmem:[#allocation13 + $0x2e0] sm:$0xff] }
  0x7e   : > { %601 = vmatpush.msra.mxu3 %v461_v47  ;;  %578 = vmatpush.msra.mxu2 %v460_v52  ;;  %450 = vst [vmem:[#allocation2 + $0x10] sm:$0xff] %v2775_v7  ;;  %v724_v11 = vld [vmem:[#allocation12 + $0xc8] sm:$0xff]  ;;  %v638_v14 = vld [vmem:[#allocation13 + $0x2b8] sm:$0xff]  ;;  %v725_v16 = vld [vmem:[#allocation12 + $0xd0] sm:$0xff] }
  0x7f   : > { %556 = vmatpush.msra.mxu1 %v493_v50  ;;  %531 = vmatpush.msra.mxu0 %v496_v53  ;;  %v722_v15 = vld [vmem:[#allocation12 + $0xb8] sm:$0xff]  ;;  %v636_v17 = vld [vmem:[#allocation13 + $0x2a8] sm:$0xff]  ;;  %v723_v20 = vld [vmem:[#allocation12 + $0xc0] sm:$0xff] }
  0x80   : > { %602 = vmatpush.msra.mxu3 %v459_v51  ;;  %579 = vmatpush.msra.mxu2 %v458_v56  ;;  %v720_v18 = vld [vmem:[#allocation12 + $0xa8] sm:$0xff]  ;;  %v634_v21 = vld [vmem:[#allocation13 + $0x298] sm:$0xff]  ;;  %v641_v24 = vld [vmem:[#allocation13 + $0x2d0] sm:$0xff] }
  0x81   : > { %557 = vmatpush.msra.mxu1 %v491_v54  ;;  %532 = vmatpush.msra.mxu0 %v494_v57  ;;  %v718_v22 = vld [vmem:[#allocation12 + $0x98] sm:$0xff]  ;;  %v486_v23 = vld [vmem:[#allocation2 + $0x7] sm:$0xff]  ;;  %v721_v27 = vld [vmem:[#allocation12 + $0xb0] sm:$0xff] }
  0x82   : > { %603 = vmatpush.msra.mxu3 %v457_v55  ;;  %580 = vmatpush.msra.mxu2 %v456_v63  ;;  %v632_v25 = vld [vmem:[#allocation13 + $0x288] sm:$0xff]  ;;  %v639_v28 = vld [vmem:[#allocation13 + $0x2c0] sm:$0xff]  ;;  %v630_v29 = vld [vmem:[#allocation13 + $0x278] sm:$0xff] }
  0x83   : > { %558 = vmatpush.msra.mxu1 %v489_v59  ;;  %533 = vmatpush.msra.mxu0 %v492_v0  ;;  %v716_v26 = vld [vmem:[#allocation12 + $0x88] sm:$0xff]  ;;  %v714_v30 = vld [vmem:[#allocation12 + $0x78] sm:$0xff]  ;;  %v719_v31 = vld [vmem:[#allocation12 + $0xa0] sm:$0xff] }
  0x84   : > { %604 = vmatpush.msra.mxu3 %v455_v60  ;;  %581 = vmatpush.msra.mxu2 %v454_v3  ;;  %v637_v32 = vld [vmem:[#allocation13 + $0x2b0] sm:$0xff]  ;;  %v628_v33 = vld [vmem:[#allocation13 + $0x268] sm:$0xff]  ;;  %v626_v36 = vld [vmem:[#allocation13 + $0x258] sm:$0xff] }
  0x85   : > { %670 = vmatpush.msrb.mxu1 %v646_v61  ;;  %534 = vmatpush.msra.mxu0 %v490_v4  ;;  %v712_v34 = vld [vmem:[#allocation12 + $0x68] sm:$0xff]  ;;  %v717_v35 = vld [vmem:[#allocation12 + $0x90] sm:$0xff]  ;;  %v710_v37 = vld [vmem:[#allocation12 + $0x58] sm:$0xff] }
  0x86   : > { %754 = vmatpush.msrb.mxu3 %v730_v62  ;;  %731 = vmatpush.msrb.mxu2 %v729_v8  ;;  %v635_v38 = vld [vmem:[#allocation13 + $0x2a0] sm:$0xff]  ;;  %v624_v40 = vld [vmem:[#allocation13 + $0x248] sm:$0xff]  ;;  %v633_v43 = vld [vmem:[#allocation13 + $0x290] sm:$0xff] }
  0x87   : > { %671 = vmatpush.msrb.mxu1 %v644_v1  ;;  %535 = vmatpush.msra.mxu0 %v488_v9  ;;  %v715_v39 = vld [vmem:[#allocation12 + $0x80] sm:$0xff]  ;;  %v708_v41 = vld [vmem:[#allocation12 + $0x48] sm:$0xff]  ;;  %v713_v44 = vld [vmem:[#allocation12 + $0x70] sm:$0xff] }
  0x88   : > { %755 = vmatpush.msrb.mxu3 %v728_v2  ;;  %732 = vmatpush.msrb.mxu2 %v727_v12  ;;  %v487_v42 = vld [vmem:[#allocation2 + $0xf] sm:$0xff]  ;;  %v622_v45 = vld [vmem:[#allocation13 + $0x238] sm:$0xff]  ;;  %v631_v47 = vld [vmem:[#allocation13 + $0x280] sm:$0xff] }
  0x89   : > { %672 = vmatpush.msrb.mxu1 %v642_v5  ;;  %647 = vmatpush.msrb.mxu0 %v645_v13  ;;  %v706_v46 = vld [vmem:[#allocation12 + $0x38] sm:$0xff]  ;;  %v711_v48 = vld [vmem:[#allocation12 + $0x60] sm:$0xff]  ;;  %v620_v49 = vld [vmem:[#allocation13 + $0x228] sm:$0xff] }
  0x8a   : > { %756 = vmatpush.msrb.mxu3 %v726_v6  ;;  %733 = vmatpush.msrb.mxu2 %v725_v16  ;;  %v704_v50 = vld [vmem:[#allocation12 + $0x28] sm:$0xff]  ;;  %v629_v51 = vld [vmem:[#allocation13 + $0x270] sm:$0xff]  ;;  %v618_v53 = vld [vmem:[#allocation13 + $0x218] sm:$0xff] }
  0x8b   : > { %673 = vmatpush.msrb.mxu1 %v640_v10  ;;  %605 = vmatmul.f32.vlgmr.msra.gmra.mxu3 %v2770_v58  ;;  %v709_v52 = vld [vmem:[#allocation12 + $0x50] sm:$0xff]  ;;  %v702_v54 = vld [vmem:[#allocation12 + $0x18] sm:$0xff]  ;;  %v627_v55 = vld [vmem:[#allocation13 + $0x260] sm:$0xff] }
  0x8c   : > { %757 = vmatpush.msrb.mxu3 %v724_v11  ;;  %648 = vmatpush.msrb.mxu0 %v643_v19  ;;  %v707_v56 = vld [vmem:[#allocation12 + $0x40] sm:$0xff]  ;;  %v616_v57 = vld [vmem:[#allocation13 + $0x208] sm:$0xff]  ;;  %v625_v59 = vld [vmem:[#allocation13 + $0x250] sm:$0xff] }
  0x8d   : > { %674 = vmatpush.msrb.mxu1 %v638_v14  ;;  %734 = vmatpush.msrb.mxu2 %v723_v20  ;;  %v612_v60 = vld [vmem:[#allocation2 + $0x9] sm:$0xff]  ;;  %v623_v63 = vld [vmem:[#allocation13 + $0x240] sm:$0xff]  ;;  %v613_v6 = vld [vmem:[#allocation2 + $0x11] sm:$0xff] }
  0x8e   : > { %758 = vmatpush.msrb.mxu3 %v722_v15  ;;  %559 = vmatmul.f32.vlgmr.msra.gmra.mxu1 %v486_v23  ;;  %v705_v61 = vld [vmem:[#allocation12 + $0x30] sm:$0xff]  ;;  %v703_v0 = vld [vmem:[#allocation12 + $0x20] sm:$0xff] }
  0x8f   : > { %675 = vmatpush.msrb.mxu1 %v636_v17  ;;  %649 = vmatpush.msrb.mxu0 %v641_v24  ;;  %v2782_v62 = vld [vmem:[%s2750_s28] sm:$0xff] }
  0x90   : > { %759 = vmatpush.msrb.mxu3 %v720_v18  ;;  %735 = vmatpush.msrb.mxu2 %v721_v27  ;;  %v621_v1 = vld [vmem:[#allocation13 + $0x230] sm:$0xff]  ;;  %v619_v3 = vld [vmem:[#allocation13 + $0x220] sm:$0xff] }
  0x91   : > { %676 = vmatpush.msrb.mxu1 %v634_v21  ;;  %650 = vmatpush.msrb.mxu0 %v639_v28  ;;  %v701_v2 = vld [vmem:[#allocation12 + $0x10] sm:$0xff]  ;;  %v699_v4 = vld [vmem:[#allocation12] sm:$0xff] }
  0x92   : > { %760 = vmatpush.msrb.mxu3 %v718_v22  ;;  %736 = vmatpush.msrb.mxu2 %v719_v31  ;;  %v617_v5 = vld [vmem:[#allocation13 + $0x210] sm:$0xff]  ;;  %v615_v8 = vld [vmem:[#allocation13 + $0x200] sm:$0xff] }
  0x93   : > { %677 = vmatpush.msrb.mxu1 %v632_v25  ;;  %651 = vmatpush.msrb.mxu0 %v637_v32  ;;  %v863_v9 = vld [vmem:[#allocation16 + $0xf0] sm:$0xff]  ;;  %v864_v10 = vld [vmem:[#allocation16 + $0xf8] sm:$0xff]  ;;  %v861_v11 = vld [vmem:[#allocation16 + $0xe0] sm:$0xff] }
  0x94   : > { %761 = vmatpush.msrb.mxu3 %v716_v26  ;;  %737 = vmatpush.msrb.mxu2 %v717_v35  ;;  %v862_v12 = vld [vmem:[#allocation16 + $0xe8] sm:$0xff]  ;;  %v859_v14 = vld [vmem:[#allocation16 + $0xd0] sm:$0xff]  ;;  %v860_v15 = vld [vmem:[#allocation16 + $0xd8] sm:$0xff] }
  0x95   : > { %678 = vmatpush.msrb.mxu1 %v630_v29  ;;  %608 = vmatmul.f32.gmra.mxu3 %v2775_v7  ;;  %v857_v16 = vld [vmem:[#allocation16 + $0xc0] sm:$0xff]  ;;  %v858_v17 = vld [vmem:[#allocation16 + $0xc8] sm:$0xff]  ;;  %v855_v18 = vld [vmem:[#allocation16 + $0xb0] sm:$0xff] }
  0x96   : > { %762 = vmatpush.msrb.mxu3 %v714_v30  ;;  %652 = vmatpush.msrb.mxu0 %v635_v38  ;;  %v856_v19 = vld [vmem:[#allocation16 + $0xb8] sm:$0xff]  ;;  %v853_v20 = vld [vmem:[#allocation16 + $0xa0] sm:$0xff]  ;;  %v854_v21 = vld [vmem:[#allocation16 + $0xa8] sm:$0xff] }
  0x97   : > { %679 = vmatpush.msrb.mxu1 %v628_v33  ;;  %738 = vmatpush.msrb.mxu2 %v715_v39  ;;  %v852_v24 = vld [vmem:[#allocation16 + $0x98] sm:$0xff]  ;;  %v849_v26 = vld [vmem:[#allocation16 + $0x80] sm:$0xff]  ;;  %v850_v27 = vld [vmem:[#allocation16 + $0x88] sm:$0xff] }
  0x98   : > { %763 = vmatpush.msrb.mxu3 %v712_v34  ;;  %582 = vmatmul.f32.vlgmr.msra.gmra.mxu2 %v2770_v58  ;;  %v700_v58 = vld [vmem:[#allocation12 + $0x8] sm:$0xff]  ;;  %v847_v28 = vld [vmem:[#allocation16 + $0x70] sm:$0xff]  ;;  %v848_v29 = vld [vmem:[#allocation16 + $0x78] sm:$0xff] }
  0x99   : > { %680 = vmatpush.msrb.mxu1 %v626_v36  ;;  %653 = vmatpush.msrb.mxu0 %v633_v43  ;;  %v845_v31 = vld [vmem:[#allocation16 + $0x60] sm:$0xff]  ;;  %v846_v32 = vld [vmem:[#allocation16 + $0x68] sm:$0xff]  ;;  %v843_v33 = vld [vmem:[#allocation16 + $0x50] sm:$0xff] }
  0x9a   : > { %764 = vmatpush.msrb.mxu3 %v710_v37  ;;  %562 = vmatmul.f32.gmra.mxu1 %v487_v42  ;;  %v844_v34 = vld [vmem:[#allocation16 + $0x58] sm:$0xff]  ;;  %v841_v37 = vld [vmem:[#allocation16 + $0x40] sm:$0xff]  ;;  %v842_v38 = vld [vmem:[#allocation16 + $0x48] sm:$0xff] }
  0x9b   : > { %681 = vmatpush.msrb.mxu1 %v624_v40  ;;  %739 = vmatpush.msrb.mxu2 %v713_v44  ;;  %v839_v39 = vld [vmem:[#allocation16 + $0x30] sm:$0xff]  ;;  %v838_v43 = vld [vmem:[#allocation16 + $0x28] sm:$0xff]  ;;  %v2792_v44 = vld [vmem:[#allocation15] sm:$0x3] }
  0x9c   : > { %765 = vmatpush.msrb.mxu3 %v708_v41  ;;  %654 = vmatpush.msrb.mxu0 %v631_v47  ;;  %v840_v41 = vld [vmem:[#allocation16 + $0x38] sm:$0xff] }
  0x9d   : > { %682 = vmatpush.msrb.mxu1 %v622_v45  ;;  %740 = vmatpush.msrb.mxu2 %v711_v48  ;;  %v836_v47 = vld [vmem:[#allocation16 + $0x18] sm:$0xff] }
  0x9e   : > { %766 = vmatpush.msrb.mxu3 %v706_v46  ;;  %536 = vmatmul.f32.vlgmr.msra.gmra.mxu0 %v486_v23  ;;  %v851_v23 = vld [vmem:[#allocation16 + $0x90] sm:$0xff] }
  0x9f   : > { %683 = vmatpush.msrb.mxu1 %v620_v49  ;;  %655 = vmatpush.msrb.mxu0 %v629_v51  ;;  %v835_v46 = vld [vmem:[#allocation16 + $0x10] sm:$0xff]  ;;  %v833_v51 = vld [vmem:[#allocation16] sm:$0xff] }
  0xa0   : > { %767 = vmatpush.msrb.mxu3 %v704_v50  ;;  %741 = vmatpush.msrb.mxu2 %v709_v52  ;;  %v784_v50 = vperm.slane %v2792_v44, 1  ;;  %v834_v52 = vld [vmem:[#allocation16 + $0x8] sm:$0xff] }
  0xa1   : > { %684 = vmatpush.msrb.mxu1 %v618_v53  ;;  %656 = vmatpush.msrb.mxu0 %v627_v55 }
  0xa2   : > { %768 = vmatpush.msrb.mxu3 %v702_v54  ;;  %742 = vmatpush.msrb.mxu2 %v707_v56 }
  0xa3   : > { %685 = vmatpush.msrb.mxu1 %v616_v57  ;;  %585 = vmatmul.f32.gmra.mxu2 %v2775_v7  ;;  %v2787_v7 = vld [vmem:[%s2750_s28 + $0x8] sm:$0xff] }
  0xa4   : > { %769 = vmatpush.msrb.mxu3 %v700_v58  ;;  %657 = vmatpush.msrb.mxu0 %v625_v59 }
  0xa5   : > { %686 = vmatmul.f32.vlgmr.msrb.gmra.mxu1 %v612_v60  ;;  %743 = vmatpush.msrb.mxu2 %v705_v61 }
  0xa6   : > { %770 = vmatmul.f32.vlgmr.msrb.gmra.mxu3 %v2782_v62  ;;  %658 = vmatpush.msrb.mxu0 %v623_v63 }
  0xa7   : > { %744 = vmatpush.msrb.mxu2 %v703_v0  ;;  %539 = vmatmul.f32.gmra.mxu0 %v487_v42  ;;  %v837_v42 = vld [vmem:[#allocation16 + $0x20] sm:$0xff] }
  0xa8   : > { %659 = vmatpush.msrb.mxu0 %v621_v1  ;;  %894 = vmatpush.msra.mxu1 %v864_v10 }
  0xa9   : > { %745 = vmatpush.msrb.mxu2 %v701_v2 }
  0xaa   : > { %660 = vmatpush.msrb.mxu0 %v619_v3  ;;  %895 = vmatpush.msra.mxu1 %v862_v12  ;;  %v995_v3 = vld [vmem:[#allocation13 + $0x3f0] sm:$0xff]  ;;  %v992_v12 = vld [vmem:[#allocation13 + $0x3d8] sm:$0xff] }
  0xab   : > { %746 = vmatpush.msrb.mxu2 %v699_v4  ;;  %v996_v4 = vld [vmem:[#allocation13 + $0x3f8] sm:$0xff] }
  0xac   : > { %747 = vmatmul.f32.vlgmr.msrb.gmra.mxu2 %v2782_v62  ;;  %661 = vmatpush.msrb.mxu0 %v617_v5  ;;  %v993_v5 = vld [vmem:[#allocation13 + $0x3e0] sm:$0xff] }
  0xad   : > { %689 = vmatmul.f32.gmra.mxu1 %v613_v6  ;;  %997 = vmatpush.msra.mxu2 %v995_v3  ;;  %v976_v3 = vld [vmem:[#allocation13 + $0x358] sm:$0xff] }
  0xae   : > { %773 = vmatmul.f32.gmra.mxu3 %v2787_v7  ;;  %662 = vmatpush.msrb.mxu0 %v615_v8 }
  0xaf   : > { %663 = vmatmul.f32.vlgmr.msrb.gmra.mxu0 %v612_v60  ;;  %896 = vmatpush.msra.mxu1 %v860_v15  ;;  %v960_v15 = vld [vmem:[#allocation13 + $0x4f0] sm:$0xff] }
  0xb0   : > { %871 = vmatpush.msra.mxu0 %v863_v9  ;;  %1020 = vmatpush.msra.mxu3 %v996_v4 }
  0xb1   : > { %897 = vmatpush.msra.mxu1 %v858_v17  ;;  %998 = vmatpush.msra.mxu2 %v993_v5  ;;  %v989_v17 = vld [vmem:[#allocation13 + $0x3c0] sm:$0xff] }
  0xb2   : > { %872 = vmatpush.msra.mxu0 %v861_v11  ;;  %v991_v11 = vld [vmem:[#allocation13 + $0x3d0] sm:$0xff] }
  0xb3   : > { %898 = vmatpush.msra.mxu1 %v856_v19  ;;  %v958_v19 = vld [vmem:[#allocation13 + $0x4e0] sm:$0xff]  ;;  %999 = vmatpush.msra.mxu2 %v991_v11 }
  0xb4   : > { %750 = vmatmul.f32.gmra.mxu2 %v2787_v7  ;;  %873 = vmatpush.msra.mxu0 %v859_v14 }
  0xb5   : > { %899 = vmatpush.msra.mxu1 %v854_v21  ;;  %v959_v21 = vld [vmem:[#allocation13 + $0x4e8] sm:$0xff]  ;;  %1000 = vmatpush.msra.mxu2 %v989_v17  ;;  %v971_v17 = vld [vmem:[#allocation13 + $0x330] sm:$0xff] }
  0xb6   : > { %874 = vmatpush.msra.mxu0 %v857_v16  ;;  %v961_v16 = vld [vmem:[#allocation13 + $0x4f8] sm:$0xff] }
  0xb7   : > { %666 = vmatmul.f32.gmra.mxu0 %v613_v6  ;;  %900 = vmatpush.msra.mxu1 %v852_v24  ;;  %v994_v6 = vld [vmem:[#allocation13 + $0x3e8] sm:$0xff]  ;;  %v957_v24 = vld [vmem:[#allocation13 + $0x4d8] sm:$0xff] }
  0xb8   : > { %875 = vmatpush.msra.mxu0 %v855_v18  ;;  %1021 = vmatpush.msra.mxu3 %v994_v6  ;;  %v990_v18 = vld [vmem:[#allocation13 + $0x3c8] sm:$0xff] }
  0xb9   : > { %901 = vmatpush.msra.mxu1 %v850_v27  ;;  %v783_v27 = vperm.slane %v2792_v44, 0 }
  0xba   : > { %876 = vmatpush.msra.mxu0 %v853_v20  ;;  %1022 = vmatpush.msra.mxu3 %v992_v12  ;;  %v987_v20 = vld [vmem:[#allocation13 + $0x3b0] sm:$0xff]  ;;  %v973_v12 = vld [vmem:[#allocation13 + $0x340] sm:$0xff] }
  0xbb   : > { %902 = vmatpush.msra.mxu1 %v848_v29  ;;  %v955_v29 = vld [vmem:[#allocation13 + $0x4c8] sm:$0xff]  ;;  %1001 = vmatpush.msra.mxu2 %v987_v20  ;;  %v940_v20 = vld [vmem:[#allocation13 + $0x450] sm:$0xff] }
  0xbc   : > { %877 = vmatpush.msra.mxu0 %v851_v23  ;;  %v956_v23 = vld [vmem:[#allocation13 + $0x4d0] sm:$0xff]  ;;  %1023 = vmatpush.msra.mxu3 %v990_v18  ;;  %v972_v18 = vld [vmem:[#allocation13 + $0x338] sm:$0xff] }
  0xbd   : > { %903 = vmatpush.msra.mxu1 %v846_v32  ;;  %v986_v32 = vld [vmem:[#allocation13 + $0x3a8] sm:$0xff] }
  0xbe   : > { %878 = vmatpush.msra.mxu0 %v849_v26 }
  0xbf   : > { %904 = vmatpush.msra.mxu1 %v844_v34  ;;  %v953_v34 = vld [vmem:[#allocation13 + $0x4b8] sm:$0xff] }
  0xc0   : > { %879 = vmatpush.msra.mxu0 %v847_v28  ;;  %v954_v28 = vld [vmem:[#allocation13 + $0x4c0] sm:$0xff] }
  0xc1   : > { %905 = vmatpush.msra.mxu1 %v842_v38 }
  0xc2   : > { %880 = vmatpush.msra.mxu0 %v845_v31  ;;  %v985_v31 = vld [vmem:[#allocation13 + $0x3a0] sm:$0xff] }
  0xc3   : > { %906 = vmatpush.msra.mxu1 %v840_v41  ;;  %1002 = vmatpush.msra.mxu2 %v985_v31 }
  0xc4   : > { %881 = vmatpush.msra.mxu0 %v843_v33  ;;  %v952_v33 = vld [vmem:[#allocation13 + $0x4b0] sm:$0xff] }
  0xc5   : > { %907 = vmatpush.msra.mxu1 %v838_v43  ;;  %v951_v43 = vld [vmem:[#allocation13 + $0x4a8] sm:$0xff] }
  0xc6   : > { %882 = vmatpush.msra.mxu0 %v841_v37  ;;  %v984_v37 = vld [vmem:[#allocation13 + $0x398] sm:$0xff] }
  0xc7   : > { %908 = vmatpush.msra.mxu1 %v836_v47  ;;  %v981_v47 = vld [vmem:[#allocation13 + $0x380] sm:$0xff] }
  0xc8   : > { %883 = vmatpush.msra.mxu0 %v839_v39 }
  0xc9   : > { %909 = vmatpush.msra.mxu1 %v834_v52  ;;  %v979_v52 = vld [vmem:[#allocation13 + $0x370] sm:$0xff] }
  0xca   : > { %884 = vmatpush.msra.mxu0 %v837_v42  ;;  %v950_v42 = vld [vmem:[#allocation13 + $0x4a0] sm:$0xff] }
  0xcb   : > { %1066 = vmatpush.msrb.mxu1 %v961_v16 }
  0xcc   : > { %885 = vmatpush.msra.mxu0 %v835_v46 }
  0xcd   : > { %1067 = vmatpush.msrb.mxu1 %v959_v21  ;;  %v941_v21 = vld [vmem:[#allocation13 + $0x458] sm:$0xff] }
  0xce   : > { %886 = vmatpush.msra.mxu0 %v833_v51 }
  0xcf   : > { %1068 = vmatpush.msrb.mxu1 %v957_v24  ;;  %v969_v24 = vld [vmem:[#allocation13 + $0x320] sm:$0xff] }
  0xd0   : > { %1043 = vmatpush.msrb.mxu0 %v960_v15 }
  0xd1   : > { %1069 = vmatpush.msrb.mxu1 %v955_v29  ;;  %v967_v29 = vld [vmem:[#allocation13 + $0x310] sm:$0xff] }
  0xd2   : > { %1044 = vmatpush.msrb.mxu0 %v958_v19 }
  0xd3   : > { %1070 = vmatpush.msrb.mxu1 %v953_v34  ;;  %v966_v34 = vld [vmem:[#allocation13 + $0x308] sm:$0xff] }
  0xd4   : > { %1045 = vmatpush.msrb.mxu0 %v956_v23 }
  0xd5   : > { %1071 = vmatpush.msrb.mxu1 %v951_v43  ;;  %v1121_v43 = vld [vmem:[#allocation13 + $0x5e8] sm:$0xff] }
  0xd6   : > { %1046 = vmatpush.msrb.mxu0 %v954_v28 }
  0xd8   : > { %1047 = vmatpush.msrb.mxu0 %v952_v33  ;;  %v965_v33 = vld [vmem:[#allocation13 + $0x300] sm:$0xff] }
  0xda   : > { %1048 = vmatpush.msrb.mxu0 %v950_v42  ;;  %v1120_v42 = vld [vmem:[#allocation13 + $0x5e0] sm:$0xff] }
 0x10b   : > { %v560_v13 = vpop.f32.mrf.mxu1 }
 0x10e   : > { %v606_v22 = vpop.f32.mrf.mxu3 }
 0x10f   : > { %v607_v45 = vadd.f32 %v606_v22, %v560_v13  ;;  %v988_v22 = vld [vmem:[#allocation13 + $0x3b8] sm:$0xff] }
 0x110   : > { %1024 = vmatpush.msra.mxu3 %v988_v22 }
 0x112   : > { %1025 = vmatpush.msra.mxu3 %v986_v32 }
 0x114   : > { %1026 = vmatpush.msra.mxu3 %v984_v37 }
 0x117   : > { %v563_v25 = vpop.f32.mrf.mxu1 }
 0x118   : > { %v609_v35 = vpop.f32.mrf.mxu3 }
 0x119   : > { %v610_v58 = vadd.f32 %v609_v35, %v563_v25 }
 0x11b   : > { %v537_v30 = vpop.f32.mrf.mxu0  ;;  %v583_v36 = vpop.f32.mrf.mxu2 }
 0x11c   : > { %v584_v1 = vadd.f32 %v583_v36, %v537_v30  ;;  %v983_v36 = vld [vmem:[#allocation13 + $0x390] sm:$0xff] }
 0x11d   : > { %1003 = vmatpush.msra.mxu2 %v983_v36 }
 0x11f   : > { %1004 = vmatpush.msra.mxu2 %v981_v47  ;;  %v1118_v47 = vld [vmem:[#allocation13 + $0x5d0] sm:$0xff] }
 0x121   : > { %1005 = vmatpush.msra.mxu2 %v979_v52  ;;  %v1117_v52 = vld [vmem:[#allocation13 + $0x5c8] sm:$0xff] }
 0x122   : > { %v687_v40 = vpop.f32.mrf.mxu1 }
 0x123   : > { %v694_v48 = vadd.f32 %v687_v40, %v607_v45 }
 0x124   : > { %v540_v49 = vpop.f32.mrf.mxu0 }
 0x126   : > { %v586_v55 = vpop.f32.mrf.mxu2 }
 0x127   : > { %v587_v25 = vadd.f32 %v586_v55, %v540_v49  ;;  %v948_v49 = vld [vmem:[#allocation13 + $0x490] sm:$0xff] }
 0x128   : > { %1049 = vmatpush.msrb.mxu0 %v948_v49  ;;  %v932_v49 = vld [vmem:[#allocation13 + $0x410] sm:$0xff] }
 0x129   : > { %v771_v53 = vpop.f32.mrf.mxu3 }
 0x12a   : > { %v778_v54 = vadd.f32 %v771_v53, %v694_v48  ;;  %v690_v57 = vpop.f32.mrf.mxu1  ;;  %v982_v48 = vld [vmem:[#allocation13 + $0x388] sm:$0xff]  ;;  %v980_v53 = vld [vmem:[#allocation13 + $0x378] sm:$0xff] }
 0x12b   : > { %v696_v60 = vadd.f32 %v690_v57, %v610_v58  ;;  %1027 = vmatpush.msra.mxu3 %v982_v48  ;;  %v947_v57 = vld [vmem:[#allocation13 + $0x488] sm:$0xff]  ;;  %v1119_v48 = vld [vmem:[#allocation13 + $0x5d8] sm:$0xff] }
 0x12c   : > { %v788_v56 = vadd.f32 %v784_v50, %v778_v54  ;;  %v664_v63 = vpop.f32.mrf.mxu0 }
 0x12d   : > { %v693_v14 = vadd.f32 %v664_v63, %v584_v1  ;;  %1028 = vmatpush.msra.mxu3 %v980_v53  ;;  %v944_v63 = vld [vmem:[#allocation13 + $0x470] sm:$0xff]  ;;  %v930_v53 = vld [vmem:[#allocation13 + $0x400] sm:$0xff] }
 0x12e   : > { %v2040_v59 = vmul.f32 -1.442695, %v788_v56  ;;  %v946_v56 = vld [vmem:[#allocation13 + $0x480] sm:$0xff] }
 0x12f   : > { %v748_v9 = vpop.f32.mrf.mxu2  ;;  %1050 = vmatpush.msrb.mxu0 %v946_v56  ;;  %v1115_v56 = vld [vmem:[#allocation13 + $0x5b8] sm:$0xff] }
 0x130   : > { %2182 = vpow2.f32 %v2040_v59  ;;  %v777_v26 = vadd.f32 %v748_v9, %v693_v14  ;;  %v943_v9 = vld [vmem:[#allocation13 + $0x468] sm:$0xff] }
 0x131   : > { %v774_v61 = vpop.f32.mrf.mxu3  ;;  %1051 = vmatpush.msrb.mxu0 %v944_v63  ;;  %v1206_v63 = vld [vmem:[#allocation12 + $0x1e8] sm:$0xff] }
 0x132   : > { %v780_v0 = vadd.f32 %v774_v61, %v696_v60  ;;  %v787_v39 = vadd.f32 %v783_v27, %v777_v26  ;;  %v977_v60 = vld [vmem:[#allocation13 + $0x360] sm:$0xff]  ;;  %v978_v61 = vld [vmem:[#allocation13 + $0x368] sm:$0xff] }
 0x133   : > { %1006 = vmatpush.msra.mxu2 %v977_v60  ;;  %1029 = vmatpush.msra.mxu3 %v978_v61  ;;  %v938_v26 = vld [vmem:[#allocation13 + $0x440] sm:$0xff]  ;;  %v1113_v60 = vld [vmem:[#allocation13 + $0x5a8] sm:$0xff] }
 0x134   : > { %v790_v2 = vadd.f32 %v784_v50, %v780_v0  ;;  %v667_v30 = vpop.f32.mrf.mxu0  ;;  %v949_v50 = vld [vmem:[#allocation13 + $0x498] sm:$0xff]  ;;  %v1205_v61 = vld [vmem:[#allocation12 + $0x1e0] sm:$0xff] }
 0x135   : > { %v695_v41 = vadd.f32 %v667_v30, %v587_v25  ;;  %1072 = vmatpush.msrb.mxu1 %v949_v50  ;;  %v945_v0 = vld [vmem:[#allocation13 + $0x478] sm:$0xff]  ;;  %1030 = vmatpush.msra.mxu3 %v976_v3  ;;  %v970_v25 = vld [vmem:[#allocation13 + $0x328] sm:$0xff] }
 0x136   : > { %v2183_v8 = vpop.eup %2182  ;;  %v2041_v10 = vmul.f32 -1.442695, %v790_v2  ;;  %v975_v2 = vld [vmem:[#allocation13 + $0x350] sm:$0xff]  ;;  %v968_v30 = vld [vmem:[#allocation13 + $0x318] sm:$0xff] }
 0x137   : > { %v2795_v13 = vadd.f32 1.0, %v2183_v8  ;;  %v751_v46 = vpop.f32.mrf.mxu2  ;;  %1073 = vmatpush.msrb.mxu1 %v947_v57  ;;  %v942_v8 = vld [vmem:[#allocation13 + $0x460] sm:$0xff]  ;;  %1007 = vmatpush.msra.mxu2 %v975_v2  ;;  %v933_v50 = vld [vmem:[#allocation13 + $0x418] sm:$0xff]  ;;  %v1207_v57 = vld [vmem:[#allocation12 + $0x1f0] sm:$0xff] }
 0x138   : > { %2184 = vpow2.f32 %v2041_v10  ;;  %v779_v54 = vadd.f32 %v751_v46, %v695_v41  ;;  %1052 = vmatpush.msrb.mxu0 %v942_v8  ;;  %v937_v41 = vld [vmem:[#allocation13 + $0x438] sm:$0xff]  ;;  %v935_v46 = vld [vmem:[#allocation13 + $0x428] sm:$0xff]  ;;  %v1203_v2 = vld [vmem:[#allocation12 + $0x1d0] sm:$0xff] }
 0x139   : > { %2186 = vrcp.f32 %v2795_v13  ;;  %v812_v55 = vand.u32 2147483648, %v2795_v13  ;;  %v810_v59 = vand.u32 2147483647, %v2795_v13  ;;  %vm806_vm1 = vweird.f32 %v2795_v13  ;;  %1074 = vmatpush.msrb.mxu1 %v945_v0  ;;  %1008 = vmatpush.msra.mxu2 %v973_v12  ;;  %v1110_v0 = vld [vmem:[#allocation13 + $0x590] sm:$0xff]  ;;  %v1204_v3 = vld [vmem:[#allocation12 + $0x1d8] sm:$0xff]  ;;  %v1202_v8 = vld [vmem:[#allocation12 + $0x1c8] sm:$0xff] }
 0x13a   : > { %v789_v5 = vadd.f32 %v783_v27, %v779_v54  ;;  %v939_v27 = vld [vmem:[#allocation13 + $0x448] sm:$0xff]  ;;  %1053 = vmatpush.msrb.mxu0 %v940_v20  ;;  %v1200_v12 = vld [vmem:[#allocation12 + $0x1b8] sm:$0xff]  ;;  %v1100_v20 = vld [vmem:[#allocation13 + $0x540] sm:$0xff] }
 0x13b   : > { %v813_v6 = vor.u32 1.1754944e-38, %v812_v55  ;;  %vm811_vm3 = vcmp.eq.f32.partialorder %v810_v59, 8.507059e+37  ;;  %1075 = vmatpush.msrb.mxu1 %v943_v9  ;;  %1009 = vmatpush.msra.mxu2 %v971_v17  ;;  %v931_v54 = vld [vmem:[#allocation13 + $0x408] sm:$0xff]  ;;  %v1114_v55 = vld [vmem:[#allocation13 + $0x5b0] sm:$0xff]  ;;  %v1112_v59 = vld [vmem:[#allocation13 + $0x5a0] sm:$0xff] }
 0x13c   : > { %1054 = vmatpush.msrb.mxu0 %v938_v26  ;;  %v1106_v9 = vld [vmem:[#allocation13 + $0x570] sm:$0xff]  ;;  %v1103_v17 = vld [vmem:[#allocation13 + $0x558] sm:$0xff] }
 0x13d   : > { %1076 = vmatpush.msrb.mxu1 %v941_v21  ;;  %1010 = vmatpush.msra.mxu2 %v969_v24  ;;  %v1101_v21 = vld [vmem:[#allocation13 + $0x548] sm:$0xff]  ;;  %v433_v24 = vlaneseq  ;;  %v1099_v26 = vld [vmem:[#allocation13 + $0x538] sm:$0xff] }
 0x13e   : > { %v2185_v35 = vpop.eup %2184 }
 0x13f   : > { %v2799_v38 = vpop.eup %2186  ;;  %v2803_v40 = vadd.f32 1.0, %v2185_v35  ;;  %1077 = vmatpush.msrb.mxu1 %v939_v27  ;;  %1011 = vmatpush.msra.mxu2 %v967_v29  ;;  %v1191_v27 = vld [vmem:[#allocation12 + $0x170] sm:$0xff]  ;;  %v1096_v29 = vld [vmem:[#allocation13 + $0x520] sm:$0xff] }
 0x140   : > { %v802_v45 = vmul.f32 %v2799_v38, %v2795_v13  ;;  %vm807_vm0 = vweird.f32 %v2799_v38  ;;  %v974_v13 = vld [vmem:[#allocation13 + $0x348] sm:$0xff] }
 0x141   : > { %2188 = vrcp.f32 %v2803_v40  ;;  %vm808_vm2 = vmor %vm806_vm1, %vm807_vm0  ;;  %v827_v19 = vand.u32 2147483648, %v2803_v40  ;;  %1031 = vmatpush.msra.mxu3 %v974_v13  ;;  %v825_v23 = vand.u32 2147483647, %v2803_v40  ;;  %vm821_vm5 = vweird.f32 %v2803_v40  ;;  %1012 = vmatpush.msra.mxu2 %v965_v33  ;;  %v1104_v13 = vld [vmem:[#allocation13 + $0x560] sm:$0xff] }
 0x142   : > { %v803_v51 = vsub.f32 1.0, %v802_v45  ;;  %2190 = vtanh.f32 %v787_v39  ;;  %v1123_v39 = vld [vmem:[#allocation13 + $0x5f8] sm:$0xff]  ;;  %1078 = vmatpush.msrb.mxu1 %v937_v41  ;;  %v934_v45 = vld [vmem:[#allocation13 + $0x420] sm:$0xff]  ;;  %v1093_v41 = vld [vmem:[#allocation13 + $0x508] sm:$0xff] }
 0x143   : > { %2192 = vtanh.f32 %v789_v5  ;;  %1032 = vmatpush.msra.mxu3 %v972_v18  ;;  %v828_v31 = vor.u32 1.1754944e-38, %v827_v19  ;;  %vm826_vm7 = vcmp.eq.f32.partialorder %v825_v23, 8.507059e+37  ;;  %v1109_v5 = vld [vmem:[#allocation13 + $0x588] sm:$0xff]  ;;  %v1195_v18 = vld [vmem:[#allocation12 + $0x190] sm:$0xff]  ;;  %v1196_v19 = vld [vmem:[#allocation12 + $0x198] sm:$0xff] }
 0x144   : > { %v804_v58 = vmul.f32 %v2799_v38, %v803_v51  ;;  %1079 = vmatpush.msrb.mxu1 %v935_v46  ;;  %v1116_v51 = vld [vmem:[#allocation13 + $0x5c0] sm:$0xff]  ;;  %v1194_v23 = vld [vmem:[#allocation12 + $0x188] sm:$0xff]  ;;  %v1183_v46 = vld [vmem:[#allocation12 + $0x130] sm:$0xff] }
 0x145   : > { %1033 = vmatpush.msra.mxu3 %v970_v25  ;;  %v1098_v25 = vld [vmem:[#allocation13 + $0x530] sm:$0xff]  ;;  %v2826_v33 = vld [vmem:[#allocation18] sm:$0x3] }
 0x146   : > { %v805_v1 = vadd.f32 %v2799_v38, %v804_v58  ;;  %1080 = vmatpush.msrb.mxu1 %v933_v50  ;;  %v1208_v58 = vld [vmem:[#allocation12 + $0x1f8] sm:$0xff]  ;;  %v1181_v50 = vld [vmem:[#allocation12 + $0x120] sm:$0xff] }
 0x147   : > { %v2189_v4 = vpop.eup %2188  ;;  %1034 = vmatpush.msra.mxu3 %v968_v30  ;;  %v1097_v30 = vld [vmem:[#allocation13 + $0x528] sm:$0xff] }
 0x148   : > { %v809_v10 = vsel %vm808_vm2, %v2799_v38, %v805_v1  ;;  %v817_v11 = vmul.f32 %v2189_v4, %v2803_v40  ;;  %v2191_v14 = vpop.eup %2190  ;;  %vm822_vm4 = vweird.f32 %v2189_v4  ;;  %v1122_v38 = vld [vmem:[#allocation13 + $0x5f0] sm:$0xff]  ;;  %1081 = vmatpush.msrb.mxu1 %v931_v54  ;;  %v1111_v1 = vld [vmem:[#allocation13 + $0x598] sm:$0xff]  ;;  %v2219_v54 = vld [vmem:[#allocation2 + $0x8] sm:$0xff] }
 0x149   : > { %v814_v44 = vsel %vm811_vm3, %v813_v6, %v809_v10  ;;  %vm823_vm6 = vmor %vm821_vm5, %vm822_vm4  ;;  %v2193_v35 = vpop.eup %2192  ;;  %1035 = vmatpush.msra.mxu3 %v966_v34  ;;  %v936_v40 = vld [vmem:[#allocation13 + $0x430] sm:$0xff]  ;;  %1124 = vmatpush.msrb.mxu2 %v1122_v38  ;;  %v1201_v6 = vld [vmem:[#allocation12 + $0x1c0] sm:$0xff] }
 0x14a   : > { %v831_v15 = vmul.f32 %v2191_v14, %v814_v44  ;;  %v818_v16 = vsub.f32 1.0, %v817_v11  ;;  %1055 = vmatpush.msrb.mxu0 %v936_v40  ;;  %v1107_v10 = vld [vmem:[#allocation13 + $0x578] sm:$0xff]  ;;  %v1199_v11 = vld [vmem:[#allocation12 + $0x1b0] sm:$0xff]  ;;  %v1105_v14 = vld [vmem:[#allocation13 + $0x568] sm:$0xff] }
 0x14b   : > { %1147 = vmatpush.msrb.mxu3 %v1123_v39  ;;  %1125 = vmatpush.msrb.mxu2 %v1120_v42  ;;  %v1197_v44 = vld [vmem:[#allocation12 + $0x1a0] sm:$0xff]  ;;  %v1094_v34 = vld [vmem:[#allocation13 + $0x510] sm:$0xff]  ;;  %v1188_v38 = vld [vmem:[#allocation12 + $0x158] sm:$0xff]  ;;  %v436_v39 = vstv %s2824_s22  ;;  %v867_v42 = vperm.slane %v2826_v33, 0 }
 0x14c   : > { %887 = vmatmul.f32.vlgmr.msra.gmra.mxu0 %v831_v15  ;;  %910 = vmatmul.f32.vlgmr.msra.gmra.mxu1 %v831_v15  ;;  %v819_v22 = vmul.f32 %v2189_v4, %v818_v16  ;;  %v1198_v15 = vld [vmem:[#allocation12 + $0x1a8] sm:$0xff]  ;;  %v1102_v16 = vld [vmem:[#allocation13 + $0x550] sm:$0xff]  ;;  %v1092_v40 = vld [vmem:[#allocation13 + $0x500] sm:$0xff] }
 0x14d   : > { %1148 = vmatpush.msrb.mxu3 %v1121_v43  ;;  %1056 = vmatpush.msrb.mxu0 %v934_v45  ;;  %v1185_v43 = vld [vmem:[#allocation12 + $0x140] sm:$0xff]  ;;  %v1186_v45 = vld [vmem:[#allocation12 + $0x148] sm:$0xff] }
 0x14e   : > { %v820_v28 = vadd.f32 %v2189_v4, %v819_v22  ;;  %1126 = vmatpush.msrb.mxu2 %v1118_v47  ;;  %1232 = vmatpush.msra.mxu1 %v1208_v58  ;;  %v1193_v22 = vld [vmem:[#allocation12 + $0x180] sm:$0xff]  ;;  %v1184_v47 = vld [vmem:[#allocation12 + $0x138] sm:$0xff] }
 0x14f   : > { %1149 = vmatpush.msrb.mxu3 %v1119_v48  ;;  %1057 = vmatpush.msrb.mxu0 %v932_v49  ;;  %v1180_v58 = vld [vmem:[#allocation12 + $0x118] sm:$0xff] }
 0x150   : > { %v824_v32 = vsel %vm823_vm6, %v2189_v4, %v820_v28  ;;  %1127 = vmatpush.msrb.mxu2 %v1116_v51  ;;  %1233 = vmatpush.msra.mxu1 %v1206_v63  ;;  %v1108_v4 = vld [vmem:[#allocation13 + $0x580] sm:$0xff]  ;;  %v1192_v28 = vld [vmem:[#allocation12 + $0x178] sm:$0xff]  ;;  %v1182_v51 = vld [vmem:[#allocation12 + $0x128] sm:$0xff] }
 0x151   : > { %v829_v36 = vsel %vm826_vm7, %v828_v31, %v824_v32  ;;  %1150 = vmatpush.msrb.mxu3 %v1117_v52  ;;  %1058 = vmatpush.msrb.mxu0 %v930_v53  ;;  %v1189_v31 = vld [vmem:[#allocation12 + $0x160] sm:$0xff]  ;;  %v1190_v32 = vld [vmem:[#allocation12 + $0x168] sm:$0xff] }
 0x152   : > { %v832_v37 = vmul.f32 %v2193_v35, %v829_v36  ;;  %1128 = vmatpush.msrb.mxu2 %v1114_v55  ;;  %1234 = vmatpush.msra.mxu1 %v1204_v3  ;;  %v1095_v35 = vld [vmem:[#allocation13 + $0x518] sm:$0xff]  ;;  %v434_v36 = vshrl.u32 %v433_v24, 7  ;;  %v2218_v52 = vld [vmem:[#allocation2] sm:$0xff] }
 0x153   : > { %1151 = vmatpush.msrb.mxu3 %v1115_v56  ;;  %1209 = vmatpush.msra.mxu0 %v1207_v57  ;;  %v1179_v57 = vld [vmem:[#allocation12 + $0x110] sm:$0xff]  ;;  %v1332_v24 = vld [vmem:[#allocation16 + $0x198] sm:$0xff] }
 0x154   : > { %890 = vmatmul.f32.gmra.mxu0 %v832_v37  ;;  %913 = vmatmul.f32.gmra.mxu1 %v832_v37  ;;  %v1187_v37 = vld [vmem:[#allocation12 + $0x150] sm:$0xff]  ;;  %vm437_vm8 = vcmp.lt.s32.totalorder %v434_v36, %v436_v39  ;;  %v435_v56 = vadd.s32 8, %v434_v36  ;;  %v1324_v36 = vld [vmem:[#allocation16 + $0x158] sm:$0xff] }
 0x155   : > { %1129 = vmatpush.msrb.mxu2 %v1112_v59  ;;  %1152 = vmatpush.msrb.mxu3 %v1113_v60  ;;  %v2830_v53 = vsel %vm437_vm8, 1.0, %v2218_v52  ;;  %v1177_v60 = vld [vmem:[#allocation12 + $0x100] sm:$0xff] }
 0x156   : > { %1210 = vmatpush.msra.mxu0 %v1205_v61  ;;  %1235 = vmatpush.msra.mxu1 %v1202_v8  ;;  %v1178_v61 = vld [vmem:[#allocation12 + $0x108] sm:$0xff]  ;;  %vm438_vm9 = vcmp.lt.s32.totalorder %v435_v56, %v436_v39  ;;  %v1319_v39 = vld [vmem:[#allocation16 + $0x130] sm:$0xff] }
 0x157   : > { %1130 = vmatpush.msrb.mxu2 %v1110_v0  ;;  %1153 = vmatpush.msrb.mxu3 %v1111_v1  ;;  %v2838_v1 = vsel %vm438_vm9, 1.0, %v2218_v52  ;;  %v1314_v56 = vld [vmem:[#allocation16 + $0x108] sm:$0xff] }
 0x158   : > { %1211 = vmatpush.msra.mxu0 %v1203_v2  ;;  %1236 = vmatpush.msra.mxu1 %v1200_v12  ;;  %v2220_v2 = vld [vmem:[#allocation2 + $0x10] sm:$0xff] }
 0x159   : > { %1131 = vmatpush.msrb.mxu2 %v1108_v4  ;;  %1154 = vmatpush.msrb.mxu3 %v1109_v5  ;;  %v1343_v12 = vld [vmem:[#allocation16 + $0x1f0] sm:$0xff] }
 0x15a   : > { %1212 = vmatpush.msra.mxu0 %v1201_v6  ;;  %1237 = vmatpush.msra.mxu1 %v1198_v15  ;;  %v1340_v15 = vld [vmem:[#allocation16 + $0x1d8] sm:$0xff] }
 0x15b   : > { %1132 = vmatpush.msrb.mxu2 %v1106_v9  ;;  %1155 = vmatpush.msrb.mxu3 %v1107_v10 }
 0x15c   : > { %1213 = vmatpush.msra.mxu0 %v1199_v11  ;;  %1238 = vmatpush.msra.mxu1 %v1196_v19  ;;  %v1336_v19 = vld [vmem:[#allocation16 + $0x1b8] sm:$0xff] }
 0x15d   : > { %1133 = vmatpush.msrb.mxu2 %v1104_v13  ;;  %1156 = vmatpush.msrb.mxu3 %v1105_v14  ;;  %v1344_v13 = vld [vmem:[#allocation16 + $0x1f8] sm:$0xff]  ;;  %v1341_v14 = vld [vmem:[#allocation16 + $0x1e0] sm:$0xff] }
 0x15e   : > { %1214 = vmatpush.msra.mxu0 %v1197_v44  ;;  %1239 = vmatpush.msra.mxu1 %v1194_v23  ;;  %v1339_v44 = vld [vmem:[#allocation16 + $0x1d0] sm:$0xff] }
 0x15f   : > { %1134 = vmatpush.msrb.mxu2 %v1102_v16  ;;  %1157 = vmatpush.msrb.mxu3 %v1103_v17  ;;  %v1337_v16 = vld [vmem:[#allocation16 + $0x1c0] sm:$0xff]  ;;  %v1338_v17 = vld [vmem:[#allocation16 + $0x1c8] sm:$0xff]  ;;  %v1331_v23 = vld [vmem:[#allocation16 + $0x190] sm:$0xff] }
 0x160   : > { %1215 = vmatpush.msra.mxu0 %v1195_v18  ;;  %1240 = vmatpush.msra.mxu1 %v1192_v28  ;;  %v1335_v18 = vld [vmem:[#allocation16 + $0x1b0] sm:$0xff] }
 0x161   : > { %1135 = vmatpush.msrb.mxu2 %v1100_v20  ;;  %1158 = vmatpush.msrb.mxu3 %v1101_v21  ;;  %v1333_v21 = vld [vmem:[#allocation16 + $0x1a0] sm:$0xff]  ;;  %v1327_v28 = vld [vmem:[#allocation16 + $0x170] sm:$0xff] }
 0x162   : > { %1216 = vmatpush.msra.mxu0 %v1193_v22  ;;  %1241 = vmatpush.msra.mxu1 %v1190_v32  ;;  %v1334_v22 = vld [vmem:[#allocation16 + $0x1a8] sm:$0xff]  ;;  %v1325_v32 = vld [vmem:[#allocation16 + $0x160] sm:$0xff] }
 0x163   : > { %1136 = vmatpush.msrb.mxu2 %v1098_v25  ;;  %1159 = vmatpush.msrb.mxu3 %v1099_v26  ;;  %v1329_v25 = vld [vmem:[#allocation16 + $0x180] sm:$0xff]  ;;  %v1330_v26 = vld [vmem:[#allocation16 + $0x188] sm:$0xff] }
 0x164   : > { %1217 = vmatpush.msra.mxu0 %v1191_v27  ;;  %1242 = vmatpush.msra.mxu1 %v1188_v38  ;;  %v1322_v38 = vld [vmem:[#allocation16 + $0x148] sm:$0xff] }
 0x165   : > { %1137 = vmatpush.msrb.mxu2 %v1096_v29  ;;  %1160 = vmatpush.msrb.mxu3 %v1097_v30  ;;  %v1328_v29 = vld [vmem:[#allocation16 + $0x178] sm:$0xff] }
 0x166   : > { %1218 = vmatpush.msra.mxu0 %v1189_v31  ;;  %1243 = vmatpush.msra.mxu1 %v1186_v45  ;;  %v1317_v45 = vld [vmem:[#allocation16 + $0x120] sm:$0xff] }
 0x167   : > { %1138 = vmatpush.msrb.mxu2 %v1094_v34  ;;  %1161 = vmatpush.msrb.mxu3 %v1095_v35  ;;  %v1326_v34 = vld [vmem:[#allocation16 + $0x168] sm:$0xff]  ;;  %v1323_v35 = vld [vmem:[#allocation16 + $0x150] sm:$0xff] }
 0x168   : > { %1219 = vmatpush.msra.mxu0 %v1187_v37  ;;  %1244 = vmatpush.msra.mxu1 %v1184_v47  ;;  %v1321_v37 = vld [vmem:[#allocation16 + $0x140] sm:$0xff] }
 0x169   : > { %1139 = vmatpush.msrb.mxu2 %v1092_v40  ;;  %1162 = vmatpush.msrb.mxu3 %v1093_v41  ;;  %v1320_v40 = vld [vmem:[#allocation16 + $0x138] sm:$0xff] }
 0x16a   : > { %1220 = vmatpush.msra.mxu0 %v1185_v43  ;;  %1245 = vmatpush.msra.mxu1 %v1182_v51 }
 0x16c   : > { %1221 = vmatpush.msra.mxu0 %v1183_v46  ;;  %1246 = vmatpush.msra.mxu1 %v1180_v58  ;;  %v1318_v46 = vld [vmem:[#allocation16 + $0x128] sm:$0xff] }
 0x16e   : > { %1222 = vmatpush.msra.mxu0 %v1181_v50  ;;  %1247 = vmatpush.msra.mxu1 %v1178_v61  ;;  %v1316_v50 = vld [vmem:[#allocation16 + $0x118] sm:$0xff] }
 0x170   : > { %1223 = vmatpush.msra.mxu0 %v1179_v57 }
 0x172   : > { %1224 = vmatpush.msra.mxu0 %v1177_v60 }
 0x1c9   : > { %v888_v48 = vpop.f32.mrf.mxu0  ;;  %v2850_v10 = vpop.f32.mrf.mxu1 }
 0x1ca   : > { %v889_v49 = vadd.f32 %v888_v48, %v867_v42 }
 0x1cc   : > { %v917_v55 = vadd.f32 %v2219_v54, %v889_v49  ;;  %v1315_v49 = vld [vmem:[#allocation16 + $0x110] sm:$0xff] }
 0x1ce   : > { %v2833_v59 = vmul.f32 %v2830_v53, %v917_v55  ;;  %v1313_v55 = vld [vmem:[#allocation16 + $0x100] sm:$0xff] }
 0x1d0   : > { %923 = vst [vmem:[#allocation2 + $0x8] sm:$0xff] %v2833_v59  ;;  %1059 = vmatmul.f32.vlgmr.msrb.gmra.mxu0 %v2833_v59  ;;  %1082 = vmatmul.f32.vlgmr.msrb.gmra.mxu1 %v2833_v59 }
 0x1d1   : > { %v891_v63 = vpop.f32.mrf.mxu0  ;;  %v2852_v11 = vpop.f32.mrf.mxu1 }
 0x1d2   : > { %v892_v0 = vadd.f32 %v891_v63, %v867_v42  ;;  %v2854_v42 = vld [vmem:[#allocation15 + $0x2] sm:$0x3] }
 0x1d3   : > { %v1263_v54 = vperm.slane %v2854_v42, 1 }
 0x1d4   : > { %v918_v3 = vadd.f32 %v2220_v2, %v892_v0 }
 0x1d6   : > { %v2841_v4 = vmul.f32 %v2838_v1, %v918_v3 }
 0x1d7   : > { %v962_v5 = vld [vmem:[#allocation2 + $0x6] sm:$0xff] }
 0x1d8   : > { %924 = vst [vmem:[#allocation2 + $0x10] sm:$0xff] %v2841_v4  ;;  %1013 = vmatmul.f32.vlgmr.msra.gmra.mxu2 %v962_v5  ;;  %1036 = vmatmul.f32.vlgmr.msra.gmra.mxu3 %v962_v5 }
 0x1d9   : > { %1062 = vmatmul.f32.gmra.mxu0 %v2841_v4  ;;  %1085 = vmatmul.f32.gmra.mxu1 %v2841_v4 }
 0x1da   : > { %1352 = vmatpush.msra.mxu2 %v1343_v12  ;;  %1375 = vmatpush.msra.mxu3 %v1344_v13  ;;  %v1481_v12 = vld [vmem:[#allocation13 + $0x6f8] sm:$0xff]  ;;  %v1445_v13 = vld [vmem:[#allocation13 + $0x7f0] sm:$0xff] }
 0x1db   : > { %1505 = vmatpush.msrb.mxu1 %v1481_v12 }
 0x1dc   : > { %1353 = vmatpush.msra.mxu2 %v1341_v14 }
 0x1de   : > { %1354 = vmatpush.msra.mxu2 %v1339_v44  ;;  %v1478_v44 = vld [vmem:[#allocation13 + $0x6e0] sm:$0xff] }
 0x1df   : > { %v963_v6 = vld [vmem:[#allocation2 + $0xe] sm:$0xff] }
 0x1e0   : > { %1016 = vmatmul.f32.gmra.mxu2 %v963_v6  ;;  %1039 = vmatmul.f32.gmra.mxu3 %v963_v6  ;;  %v1089_v8 = vld [vmem:[#allocation2 + $0xa] sm:$0xff]  ;;  %v1090_v9 = vld [vmem:[#allocation2 + $0x12] sm:$0xff] }
 0x1e1   : > { %1225 = vmatmul.f32.vlgmr.msra.gmra.mxu0 %v2782_v62  ;;  %1248 = vmatmul.f32.vlgmr.msra.gmra.mxu1 %v2782_v62  ;;  %v1342_v62 = vld [vmem:[#allocation16 + $0x1e8] sm:$0xff] }
 0x1e2   : > { %1376 = vmatpush.msra.mxu3 %v1342_v62  ;;  %1355 = vmatpush.msra.mxu2 %v1337_v16  ;;  %v1446_v62 = vld [vmem:[#allocation13 + $0x7f8] sm:$0xff] }
 0x1e4   : > { %1377 = vmatpush.msra.mxu3 %v1340_v15  ;;  %1356 = vmatpush.msra.mxu2 %v1335_v18  ;;  %v1479_v15 = vld [vmem:[#allocation13 + $0x6e8] sm:$0xff]  ;;  %v1443_v18 = vld [vmem:[#allocation13 + $0x7e0] sm:$0xff] }
 0x1e5   : > { %1506 = vmatpush.msrb.mxu1 %v1479_v15 }
 0x1e6   : > { %1378 = vmatpush.msra.mxu3 %v1338_v17  ;;  %1357 = vmatpush.msra.mxu2 %v1333_v21 }
 0x1e8   : > { %1140 = vmatmul.f32.vlgmr.msrb.gmra.mxu2 %v1089_v8  ;;  %1163 = vmatmul.f32.vlgmr.msrb.gmra.mxu3 %v1089_v8 }
 0x1e9   : > { %1228 = vmatmul.f32.gmra.mxu0 %v2787_v7  ;;  %1251 = vmatmul.f32.gmra.mxu1 %v2787_v7 }
 0x1ea   : > { %1379 = vmatpush.msra.mxu3 %v1336_v19  ;;  %1358 = vmatpush.msra.mxu2 %v1331_v23  ;;  %v1444_v19 = vld [vmem:[#allocation13 + $0x7e8] sm:$0xff]  ;;  %v1477_v23 = vld [vmem:[#allocation13 + $0x6d8] sm:$0xff] }
 0x1eb   : > { %1507 = vmatpush.msrb.mxu1 %v1477_v23 }
 0x1ec   : > { %1380 = vmatpush.msra.mxu3 %v1334_v22  ;;  %1359 = vmatpush.msra.mxu2 %v1329_v25  ;;  %v1442_v25 = vld [vmem:[#allocation13 + $0x7d8] sm:$0xff] }
 0x1ee   : > { %1381 = vmatpush.msra.mxu3 %v1332_v24  ;;  %1360 = vmatpush.msra.mxu2 %v1327_v28  ;;  %v1441_v24 = vld [vmem:[#allocation13 + $0x7d0] sm:$0xff]  ;;  %v1439_v28 = vld [vmem:[#allocation13 + $0x7c0] sm:$0xff] }
 0x1f0   : > { %1143 = vmatmul.f32.gmra.mxu2 %v1090_v9  ;;  %1166 = vmatmul.f32.gmra.mxu3 %v1090_v9  ;;  %v1480_v9 = vld [vmem:[#allocation13 + $0x6f0] sm:$0xff] }
 0x1f1   : > { %1382 = vmatpush.msra.mxu3 %v1330_v26  ;;  %1361 = vmatpush.msra.mxu2 %v1325_v32  ;;  %v1474_v26 = vld [vmem:[#allocation13 + $0x6c0] sm:$0xff] }
 0x1f2   : > { %1482 = vmatpush.msrb.mxu0 %v1480_v9 }
 0x1f3   : > { %1383 = vmatpush.msra.mxu3 %v1328_v29  ;;  %1362 = vmatpush.msra.mxu2 %v1323_v35  ;;  %v1440_v29 = vld [vmem:[#allocation13 + $0x7c8] sm:$0xff]  ;;  %v1437_v35 = vld [vmem:[#allocation13 + $0x7b0] sm:$0xff] }
 0x1f4   : > { %1483 = vmatpush.msrb.mxu0 %v1478_v44  ;;  %v1428_v44 = vld [vmem:[#allocation13 + $0x768] sm:$0xff] }
 0x1f5   : > { %1384 = vmatpush.msra.mxu3 %v1326_v34  ;;  %1363 = vmatpush.msra.mxu2 %v1321_v37  ;;  %v1262_v34 = vperm.slane %v2854_v42, 0 }
 0x1f7   : > { %1385 = vmatpush.msra.mxu3 %v1324_v36  ;;  %1364 = vmatpush.msra.mxu2 %v1319_v39  ;;  %v1438_v36 = vld [vmem:[#allocation13 + $0x7b8] sm:$0xff]  ;;  %v1471_v39 = vld [vmem:[#allocation13 + $0x6a8] sm:$0xff] }
 0x1f9   : > { %1386 = vmatpush.msra.mxu3 %v1322_v38  ;;  %1365 = vmatpush.msra.mxu2 %v1317_v45  ;;  %v1470_v38 = vld [vmem:[#allocation13 + $0x6a0] sm:$0xff] }
 0x1fb   : > { %1387 = vmatpush.msra.mxu3 %v1320_v40  ;;  %1366 = vmatpush.msra.mxu2 %v1315_v49 }
 0x1fd   : > { %1388 = vmatpush.msra.mxu3 %v1318_v46  ;;  %1367 = vmatpush.msra.mxu2 %v1313_v55  ;;  %v1468_v46 = vld [vmem:[#allocation13 + $0x690] sm:$0xff] }
 0x1ff   : > { %1389 = vmatpush.msra.mxu3 %v1316_v50  ;;  %1528 = vmatpush.msrb.mxu2 %v1445_v13  ;;  %v1462_v13 = vld [vmem:[#allocation13 + $0x660] sm:$0xff] }
 0x201   : > { %1390 = vmatpush.msra.mxu3 %v1314_v56  ;;  %1529 = vmatpush.msrb.mxu2 %v1443_v18 }
 0x203   : > { %1551 = vmatpush.msrb.mxu3 %v1446_v62  ;;  %1530 = vmatpush.msrb.mxu2 %v1441_v24  ;;  %v1427_v62 = vld [vmem:[#allocation13 + $0x760] sm:$0xff] }
 0x204   : > { %v1458_v24 = vld [vmem:[#allocation13 + $0x640] sm:$0xff] }
 0x205   : > { %1552 = vmatpush.msrb.mxu3 %v1444_v19  ;;  %1531 = vmatpush.msrb.mxu2 %v1439_v28 }
 0x207   : > { %1553 = vmatpush.msrb.mxu3 %v1442_v25  ;;  %1532 = vmatpush.msrb.mxu2 %v1437_v35  ;;  %v1459_v25 = vld [vmem:[#allocation13 + $0x648] sm:$0xff] }
 0x209   : > { %1554 = vmatpush.msrb.mxu3 %v1440_v29  ;;  %v1423_v29 = vld [vmem:[#allocation13 + $0x740] sm:$0xff] }
 0x20b   : > { %1555 = vmatpush.msrb.mxu3 %v1438_v36 }
 0x24d   : > { %v1083_v7 = vpop.f32.mrf.mxu1  ;;  %v1060_v41 = vpop.f32.mrf.mxu0 }
 0x256   : > { %v1086_v27 = vpop.f32.mrf.mxu1  ;;  %v1063_v60 = vpop.f32.mrf.mxu0 }
 0x25b   : > { %v1037_v20 = vpop.f32.mrf.mxu3  ;;  %v1014_v30 = vpop.f32.mrf.mxu2 }
 0x25c   : > { %v1084_v47 = vadd.f32 %v1083_v7, %v1037_v20  ;;  %v1061_v14 = vadd.f32 %v1060_v41, %v1014_v30  ;;  %v1476_v20 = vld [vmem:[#allocation13 + $0x6d0] sm:$0xff]  ;;  %v1435_v41 = vld [vmem:[#allocation13 + $0x7a0] sm:$0xff] }
 0x25d   : > { %1484 = vmatpush.msrb.mxu0 %v1476_v20  ;;  %v1472_v30 = vld [vmem:[#allocation13 + $0x6b0] sm:$0xff]  ;;  %1533 = vmatpush.msrb.mxu2 %v1435_v41 }
 0x25e   : > { %v1249_v43 = vpop.f32.mrf.mxu1  ;;  %v1226_v16 = vpop.f32.mrf.mxu0  ;;  %v1425_v20 = vld [vmem:[#allocation13 + $0x750] sm:$0xff] }
 0x25f   : > { %1485 = vmatpush.msrb.mxu0 %v1474_v26 }
 0x261   : > { %1486 = vmatpush.msrb.mxu0 %v1472_v30  ;;  %v1424_v30 = vld [vmem:[#allocation13 + $0x748] sm:$0xff] }
 0x263   : > { %v1040_v31 = vpop.f32.mrf.mxu3  ;;  %v2856_v51 = vpop.f32.mrf.mxu2  ;;  %1487 = vmatpush.msrb.mxu0 %v1470_v38  ;;  %v1422_v38 = vld [vmem:[#allocation13 + $0x738] sm:$0xff] }
 0x264   : > { %v1087_v61 = vadd.f32 %v1086_v27, %v1040_v31  ;;  %v1475_v27 = vld [vmem:[#allocation13 + $0x6c8] sm:$0xff]  ;;  %v1473_v31 = vld [vmem:[#allocation13 + $0x6b8] sm:$0xff]  ;;  %v1064_v40 = vadd.f32 %v1063_v60, %v2856_v51  ;;  %v1433_v51 = vld [vmem:[#allocation13 + $0x790] sm:$0xff] }
 0x265   : > { %1508 = vmatpush.msrb.mxu1 %v1475_v27  ;;  %1488 = vmatpush.msrb.mxu0 %v1468_v46  ;;  %v1431_v60 = vld [vmem:[#allocation13 + $0x780] sm:$0xff] }
 0x266   : > { %v1252_v2 = vpop.f32.mrf.mxu1  ;;  %v1229_v56 = vpop.f32.mrf.mxu0  ;;  %1534 = vmatpush.msrb.mxu2 %v1433_v51  ;;  %v1418_v51 = vld [vmem:[#allocation13 + $0x718] sm:$0xff] }
 0x267   : > { %1509 = vmatpush.msrb.mxu1 %v1473_v31 }
 0x268   : > { %1535 = vmatpush.msrb.mxu2 %v1431_v60  ;;  %v1416_v60 = vld [vmem:[#allocation13 + $0x708] sm:$0xff] }
 0x269   : > { %1510 = vmatpush.msrb.mxu1 %v1471_v39  ;;  %v1454_v39 = vld [vmem:[#allocation13 + $0x620] sm:$0xff] }
 0x26b   : > { %v1164_v48 = vpop.f32.mrf.mxu3  ;;  %v1141_v5 = vpop.f32.mrf.mxu2 }
 0x26c   : > { %v1171_v52 = vadd.f32 %v1164_v48, %v1084_v47  ;;  %v1170_v21 = vadd.f32 %v1141_v5, %v1061_v14  ;;  %v1469_v47 = vld [vmem:[#allocation13 + $0x698] sm:$0xff]  ;;  %v1463_v14 = vld [vmem:[#allocation13 + $0x668] sm:$0xff] }
 0x26d   : > { %1511 = vmatpush.msrb.mxu1 %v1469_v47  ;;  %v1452_v47 = vld [vmem:[#allocation13 + $0x610] sm:$0xff] }
 0x26e   : > { %v1256_v57 = vadd.f32 %v1249_v43, %v1171_v52  ;;  %v1255_v32 = vadd.f32 %v1226_v16, %v1170_v21  ;;  %v1436_v43 = vld [vmem:[#allocation13 + $0x7a8] sm:$0xff]  ;;  %v1461_v16 = vld [vmem:[#allocation13 + $0x658] sm:$0xff] }
 0x26f   : > { %1556 = vmatpush.msrb.mxu3 %v1436_v43  ;;  %v1426_v21 = vld [vmem:[#allocation13 + $0x758] sm:$0xff]  ;;  %v1419_v43 = vld [vmem:[#allocation13 + $0x720] sm:$0xff] }
 0x270   : > { %v1267_v58 = vadd.f32 %v1263_v54, %v1256_v57  ;;  %v1266_v49 = vadd.f32 %v1262_v34, %v1255_v32  ;;  %v1466_v57 = vld [vmem:[#allocation13 + $0x680] sm:$0xff]  ;;  %v1456_v32 = vld [vmem:[#allocation13 + $0x630] sm:$0xff] }
 0x271   : > { %1489 = vmatpush.msrb.mxu0 %v1466_v57  ;;  %v1451_v57 = vld [vmem:[#allocation13 + $0x608] sm:$0xff] }
 0x272   : > { %v2042_v63 = vmul.f32 -1.442695, %v1267_v58  ;;  %v1467_v58 = vld [vmem:[#allocation13 + $0x688] sm:$0xff] }
 0x273   : > { %v1167_v0 = vpop.f32.mrf.mxu3  ;;  %v1144_v37 = vpop.f32.mrf.mxu2  ;;  %1512 = vmatpush.msrb.mxu1 %v1467_v58  ;;  %v1415_v58 = vld [vmem:[#allocation13 + $0x700] sm:$0xff] }
 0x274   : > { %2194 = vpow2.f32 %v2042_v63  ;;  %v1173_v3 = vadd.f32 %v1167_v0, %v1087_v61  ;;  %v1172_v50 = vadd.f32 %v1144_v37, %v1064_v40  ;;  %v1432_v61 = vld [vmem:[#allocation13 + $0x788] sm:$0xff]  ;;  %v1464_v0 = vld [vmem:[#allocation13 + $0x670] sm:$0xff] }
 0x275   : > { %1490 = vmatpush.msrb.mxu0 %v1464_v0  ;;  %v1421_v37 = vld [vmem:[#allocation13 + $0x730] sm:$0xff]  ;;  %v1455_v40 = vld [vmem:[#allocation13 + $0x628] sm:$0xff]  ;;  %v1690_v0 = vld [vmem:[#allocation12 + $0x2e0] sm:$0xff] }
 0x276   : > { %v1258_v6 = vadd.f32 %v1252_v2, %v1173_v3  ;;  %v1465_v2 = vld [vmem:[#allocation13 + $0x678] sm:$0xff]  ;;  %v1257_v3 = vadd.f32 %v1229_v56, %v1172_v50  ;;  %v1417_v50 = vld [vmem:[#allocation13 + $0x710] sm:$0xff]  ;;  %v1450_v56 = vld [vmem:[#allocation13 + $0x600] sm:$0xff] }
 0x277   : > { %1513 = vmatpush.msrb.mxu1 %v1465_v2  ;;  %1491 = vmatpush.msrb.mxu0 %v1462_v13  ;;  %v1691_v2 = vld [vmem:[#allocation12 + $0x2e8] sm:$0xff]  ;;  %v1686_v13 = vld [vmem:[#allocation12 + $0x2c0] sm:$0xff] }
 0x278   : > { %v1269_v8 = vadd.f32 %v1263_v54, %v1258_v6  ;;  %v1434_v54 = vld [vmem:[#allocation13 + $0x798] sm:$0xff]  ;;  %v1429_v6 = vld [vmem:[#allocation13 + $0x770] sm:$0xff]  ;;  %v1268_v18 = vadd.f32 %v1262_v34, %v1257_v3 }
 0x279   : > { %1557 = vmatpush.msrb.mxu3 %v1434_v54  ;;  %1536 = vmatpush.msrb.mxu2 %v1429_v6  ;;  %v1457_v34 = vld [vmem:[#allocation13 + $0x638] sm:$0xff]  ;;  %v1607_v3 = vld [vmem:[#allocation13 + $0x8f0] sm:$0xff] }
 0x27a   : > { %v2195_v7 = vpop.eup %2194  ;;  %v2043_v17 = vmul.f32 -1.442695, %v1269_v8  ;;  %v1430_v8 = vld [vmem:[#allocation13 + $0x778] sm:$0xff]  ;;  %1514 = vmatpush.msrb.mxu1 %v1463_v14  ;;  %v1688_v6 = vld [vmem:[#allocation12 + $0x2d0] sm:$0xff]  ;;  %v1687_v14 = vld [vmem:[#allocation12 + $0x2c8] sm:$0xff] }
 0x27b   : > { %v2859_v22 = vadd.f32 1.0, %v2195_v7  ;;  %1558 = vmatpush.msrb.mxu3 %v1432_v61  ;;  %v1460_v7 = vld [vmem:[#allocation13 + $0x650] sm:$0xff]  ;;  %1537 = vmatpush.msrb.mxu2 %v1427_v62 }
 0x27c   : > { %2196 = vpow2.f32 %v2043_v17  ;;  %1492 = vmatpush.msrb.mxu0 %v1460_v7  ;;  %1515 = vmatpush.msrb.mxu1 %v1461_v16  ;;  %v1692_v61 = vld [vmem:[#allocation12 + $0x2f0] sm:$0xff]  ;;  %v1685_v7 = vld [vmem:[#allocation12 + $0x2b8] sm:$0xff]  ;;  %v1601_v16 = vld [vmem:[#allocation13 + $0x8c0] sm:$0xff] }
 0x27d   : > { %2198 = vrcp.f32 %v2859_v22  ;;  %v1291_v5 = vand.u32 2147483648, %v2859_v22  ;;  %v1289_v12 = vand.u32 2147483647, %v2859_v22  ;;  %vm1285_vm11 = vweird.f32 %v2859_v22  ;;  %1559 = vmatpush.msrb.mxu3 %v1430_v8  ;;  %1538 = vmatpush.msrb.mxu2 %v1425_v20  ;;  %v1689_v8 = vld [vmem:[#allocation12 + $0x2d8] sm:$0xff]  ;;  %v1603_v62 = vld [vmem:[#allocation13 + $0x8d0] sm:$0xff] }
 0x27e   : > { %1493 = vmatpush.msrb.mxu0 %v1458_v24  ;;  %1516 = vmatpush.msrb.mxu1 %v1459_v25  ;;  %v1599_v20 = vld [vmem:[#allocation13 + $0x8b0] sm:$0xff]  ;;  %v1597_v24 = vld [vmem:[#allocation13 + $0x8a0] sm:$0xff]  ;;  %v1598_v25 = vld [vmem:[#allocation13 + $0x8a8] sm:$0xff] }
 0x27f   : > { %v1292_v19 = vor.u32 1.1754944e-38, %v1291_v5  ;;  %vm1290_vm13 = vcmp.eq.f32.partialorder %v1289_v12, 8.507059e+37  ;;  %1560 = vmatpush.msrb.mxu3 %v1428_v44  ;;  %1539 = vmatpush.msrb.mxu2 %v1423_v29  ;;  %v1608_v5 = vld [vmem:[#allocation13 + $0x8f8] sm:$0xff]  ;;  %v1606_v12 = vld [vmem:[#allocation13 + $0x8e8] sm:$0xff]  ;;  %v1676_v29 = vld [vmem:[#allocation12 + $0x270] sm:$0xff] }
 0x280   : > { %1494 = vmatpush.msrb.mxu0 %v1456_v32  ;;  %1517 = vmatpush.msrb.mxu1 %v1457_v34  ;;  %v1604_v44 = vld [vmem:[#allocation13 + $0x8d8] sm:$0xff]  ;;  %v1594_v32 = vld [vmem:[#allocation13 + $0x888] sm:$0xff]  ;;  %v1674_v34 = vld [vmem:[#allocation12 + $0x260] sm:$0xff] }
 0x281   : > { %1561 = vmatpush.msrb.mxu3 %v1426_v21  ;;  %1540 = vmatpush.msrb.mxu2 %v1421_v37  ;;  %v1600_v21 = vld [vmem:[#allocation13 + $0x8b8] sm:$0xff]  ;;  %v1589_v37 = vld [vmem:[#allocation13 + $0x860] sm:$0xff] }
 0x282   : > { %v2197_v45 = vpop.eup %2196  ;;  %1495 = vmatpush.msrb.mxu0 %v1454_v39  ;;  %1518 = vmatpush.msrb.mxu1 %v1455_v40  ;;  %v1675_v39 = vld [vmem:[#allocation12 + $0x268] sm:$0xff]  ;;  %v1672_v40 = vld [vmem:[#allocation12 + $0x250] sm:$0xff] }
 0x283   : > { %v2864_v48 = vpop.eup %2198  ;;  %v2868_v52 = vadd.f32 1.0, %v2197_v45  ;;  %1562 = vmatpush.msrb.mxu3 %v1424_v30  ;;  %v1420_v45 = vld [vmem:[#allocation13 + $0x728] sm:$0xff]  ;;  %1541 = vmatpush.msrb.mxu2 %v1419_v43  ;;  %v1677_v30 = vld [vmem:[#allocation12 + $0x278] sm:$0xff]  ;;  %v1587_v43 = vld [vmem:[#allocation13 + $0x850] sm:$0xff] }
 0x284   : > { %v1281_v55 = vmul.f32 %v2864_v48, %v2859_v22  ;;  %vm1286_vm10 = vweird.f32 %v2864_v48  ;;  %1496 = vmatpush.msrb.mxu0 %v1452_v47  ;;  %v1671_v47 = vld [vmem:[#allocation12 + $0x248] sm:$0xff] }
 0x285   : > { %2200 = vrcp.f32 %v2868_v52  ;;  %vm1287_vm12 = vmor %vm1285_vm11, %vm1286_vm10  ;;  %v1306_v31 = vand.u32 2147483648, %v2868_v52  ;;  %v1304_v36 = vand.u32 2147483647, %v2868_v52  ;;  %vm1300_vm15 = vweird.f32 %v2868_v52  ;;  %1563 = vmatpush.msrb.mxu3 %v1422_v38  ;;  %1542 = vmatpush.msrb.mxu2 %v1417_v50  ;;  %v1590_v38 = vld [vmem:[#allocation13 + $0x868] sm:$0xff]  ;;  %v1668_v50 = vld [vmem:[#allocation12 + $0x230] sm:$0xff] }
 0x286   : > { %v1282_v63 = vsub.f32 1.0, %v1281_v55  ;;  %2202 = vtanh.f32 %v1266_v49  ;;  %1497 = vmatpush.msrb.mxu0 %v1450_v56  ;;  %v1667_v56 = vld [vmem:[#allocation12 + $0x228] sm:$0xff] }
 0x287   : > { %2204 = vtanh.f32 %v1268_v18  ;;  %v1307_v46 = vor.u32 1.1754944e-38, %v1306_v31  ;;  %vm1305_vm1 = vcmp.eq.f32.partialorder %v1304_v36, 8.507059e+37  ;;  %1564 = vmatpush.msrb.mxu3 %v1420_v45  ;;  %1543 = vmatpush.msrb.mxu2 %v1415_v58  ;;  %v1682_v18 = vld [vmem:[#allocation12 + $0x2a0] sm:$0xff]  ;;  %v1592_v36 = vld [vmem:[#allocation13 + $0x878] sm:$0xff]  ;;  %v1582_v58 = vld [vmem:[#allocation13 + $0x828] sm:$0xff] }
 0x288   : > { %v1283_v9 = vmul.f32 %v2864_v48, %v1282_v63  ;;  %v1693_v63 = vld [vmem:[#allocation12 + $0x2f8] sm:$0xff]  ;;  %1609 = vmatpush.msra.mxu0 %v1607_v3  ;;  %v1593_v31 = vld [vmem:[#allocation13 + $0x880] sm:$0xff] }
 0x289   : > { %1565 = vmatpush.msrb.mxu3 %v1418_v51  ;;  %v1588_v45 = vld [vmem:[#allocation13 + $0x858] sm:$0xff]  ;;  %v1662_v3 = vld [vmem:[#allocation12 + $0x200] sm:$0xff] }
 0x28a   : > { %v1284_v15 = vadd.f32 %v2864_v48, %v1283_v9  ;;  %v1605_v9 = vld [vmem:[#allocation13 + $0x8e0] sm:$0xff]  ;;  %v1669_v51 = vld [vmem:[#allocation12 + $0x238] sm:$0xff] }
 0x28b   : > { %v2879_v17 = vpop.eup %2200  ;;  %1566 = vmatpush.msrb.mxu3 %v1416_v60  ;;  %1610 = vmatpush.msra.mxu0 %v1605_v9  ;;  %v2895_v60 = vld [vmem:[#allocation18 + $0x2] sm:$0x3]  ;;  %v868_v9 = vperm.slane %v2826_v33, 1 }
 0x28c   : > { %v1288_v23 = vsel %vm1287_vm12, %v2864_v48, %v1284_v15  ;;  %v1296_v22 = vmul.f32 %v2879_v17, %v2868_v52  ;;  %v2203_v42 = vpop.eup %2202  ;;  %vm1301_vm14 = vweird.f32 %v2879_v17  ;;  %v1453_v48 = vld [vmem:[#allocation13 + $0x618] sm:$0xff]  ;;  %v1684_v15 = vld [vmem:[#allocation12 + $0x2b0] sm:$0xff] }
 0x28d   : > { %v1293_v26 = vsel %vm1290_vm13, %v1292_v19, %v1288_v23  ;;  %vm1302_vm0 = vmor %vm1300_vm15, %vm1301_vm14  ;;  %v2205_v54 = vpop.eup %2204  ;;  %1519 = vmatpush.msrb.mxu1 %v1453_v48  ;;  %1611 = vmatpush.msra.mxu0 %v1603_v62  ;;  %v1683_v19 = vld [vmem:[#allocation12 + $0x2a8] sm:$0xff]  ;;  %v1680_v23 = vld [vmem:[#allocation12 + $0x290] sm:$0xff] }
 0x28e   : > { %v1310_v27 = vmul.f32 %v2203_v42, %v1293_v26  ;;  %v1297_v28 = vsub.f32 1.0, %v1296_v22  ;;  %v1681_v22 = vld [vmem:[#allocation12 + $0x298] sm:$0xff]  ;;  %v1678_v42 = vld [vmem:[#allocation12 + $0x280] sm:$0xff]  ;;  %v1679_v26 = vld [vmem:[#allocation12 + $0x288] sm:$0xff] }
 0x28f   : > { %1520 = vmatpush.msrb.mxu1 %v1451_v57  ;;  %1612 = vmatpush.msra.mxu0 %v1601_v16  ;;  %v1585_v48 = vld [vmem:[#allocation13 + $0x840] sm:$0xff] }
 0x290   : > { %1368 = vmatmul.f32.vlgmr.msra.gmra.mxu2 %v1310_v27  ;;  %1391 = vmatmul.f32.vlgmr.msra.gmra.mxu3 %v1310_v27  ;;  %v1298_v35 = vmul.f32 %v2879_v17, %v1297_v28  ;;  %v1595_v27 = vld [vmem:[#allocation13 + $0x890] sm:$0xff]  ;;  %v1596_v28 = vld [vmem:[#allocation13 + $0x898] sm:$0xff]  ;;  %v1581_v57 = vld [vmem:[#allocation13 + $0x820] sm:$0xff] }
 0x291   : > { %1694 = vmatpush.msra.mxu2 %v1692_v61  ;;  %1717 = vmatpush.msra.mxu3 %v1693_v63  ;;  %v1664_v61 = vld [vmem:[#allocation12 + $0x210] sm:$0xff]  ;;  %v1665_v63 = vld [vmem:[#allocation12 + $0x218] sm:$0xff] }
 0x292   : > { %v1299_v41 = vadd.f32 %v2879_v17, %v1298_v35  ;;  %1632 = vmatpush.msra.mxu1 %v1608_v5  ;;  %1613 = vmatpush.msra.mxu0 %v1599_v20  ;;  %v1591_v35 = vld [vmem:[#allocation13 + $0x870] sm:$0xff]  ;;  %v1663_v5 = vld [vmem:[#allocation12 + $0x208] sm:$0xff] }
 0x293   : > { %1695 = vmatpush.msra.mxu2 %v1690_v0  ;;  %1718 = vmatpush.msra.mxu3 %v1691_v2  ;;  %v1579_v0 = vld [vmem:[#allocation13 + $0x810] sm:$0xff]  ;;  %v1580_v2 = vld [vmem:[#allocation13 + $0x818] sm:$0xff] }
 0x294   : > { %v1303_v49 = vsel %vm1302_vm0, %v2879_v17, %v1299_v41  ;;  %1633 = vmatpush.msra.mxu1 %v1606_v12  ;;  %v1602_v17 = vld [vmem:[#allocation13 + $0x8c8] sm:$0xff]  ;;  %1614 = vmatpush.msra.mxu0 %v1597_v24  ;;  %v1673_v41 = vld [vmem:[#allocation12 + $0x258] sm:$0xff]  ;;  %v1348_v12 = vperm.slane %v2895_v60, 0 }
 0x295   : > { %v1308_v55 = vsel %vm1305_vm1, %v1307_v46, %v1303_v49  ;;  %1696 = vmatpush.msra.mxu2 %v1688_v6  ;;  %1719 = vmatpush.msra.mxu3 %v1689_v8  ;;  %v1670_v46 = vld [vmem:[#allocation12 + $0x240] sm:$0xff]  ;;  %v1586_v49 = vld [vmem:[#allocation13 + $0x848] sm:$0xff] }
 0x296   : > { %v1311_v52 = vmul.f32 %v2205_v54, %v1308_v55  ;;  %1634 = vmatpush.msra.mxu1 %v1604_v44  ;;  %1615 = vmatpush.msra.mxu0 %v1595_v27  ;;  %v1666_v54 = vld [vmem:[#allocation12 + $0x220] sm:$0xff]  ;;  %v1583_v55 = vld [vmem:[#allocation13 + $0x830] sm:$0xff]  ;;  %v1578_v8 = vld [vmem:[#allocation13 + $0x808] sm:$0xff]  ;;  %v912_v44 = vadd.f32 %v2850_v10, %v868_v9 }
 0x297   : > { %1697 = vmatpush.msra.mxu2 %v1686_v13  ;;  %1720 = vmatpush.msra.mxu3 %v1687_v14  ;;  %v1577_v6 = vld [vmem:[#allocation13 + $0x800] sm:$0xff]  ;;  %v1349_v13 = vperm.slane %v2895_v60, 1  ;;  %v1660_v24 = vld [vmem:[%s2750_s28 + $0x8] sm:$0xff] }
 0x298   : > { %1371 = vmatmul.f32.gmra.mxu2 %v1311_v52  ;;  %1394 = vmatmul.f32.gmra.mxu3 %v1311_v52  ;;  %v1584_v52 = vld [vmem:[#allocation13 + $0x838] sm:$0xff] }
 0x299   : > { %1698 = vmatpush.msra.mxu2 %v1684_v15  ;;  %1721 = vmatpush.msra.mxu3 %v1685_v7  ;;  %v1811_v27 = vld [vmem:[#allocation16 + $0x2d8] sm:$0xff] }
 0x29a   : > { %1635 = vmatpush.msra.mxu1 %v1602_v17  ;;  %1616 = vmatpush.msra.mxu0 %v1593_v31 }
 0x29b   : > { %1699 = vmatpush.msra.mxu2 %v1682_v18  ;;  %1722 = vmatpush.msra.mxu3 %v1683_v19 }
 0x29c   : > { %1636 = vmatpush.msra.mxu1 %v1600_v21  ;;  %1617 = vmatpush.msra.mxu0 %v1591_v35  ;;  %v1806_v35 = vld [vmem:[#allocation16 + $0x288] sm:$0xff] }
 0x29d   : > { %1700 = vmatpush.msra.mxu2 %v1680_v23  ;;  %1723 = vmatpush.msra.mxu3 %v1681_v22 }
 0x29e   : > { %1637 = vmatpush.msra.mxu1 %v1598_v25  ;;  %1618 = vmatpush.msra.mxu0 %v1589_v37 }
 0x29f   : > { %1701 = vmatpush.msra.mxu2 %v1678_v42  ;;  %1724 = vmatpush.msra.mxu3 %v1679_v26  ;;  %v1813_v42 = vld [vmem:[#allocation16 + $0x2f8] sm:$0xff]  ;;  %v1812_v26 = vld [vmem:[#allocation16 + $0x2e8] sm:$0xff] }
 0x2a0   : > { %1638 = vmatpush.msra.mxu1 %v1596_v28  ;;  %1619 = vmatpush.msra.mxu0 %v1587_v43  ;;  %v1810_v28 = vld [vmem:[#allocation16 + $0x2c8] sm:$0xff] }
 0x2a1   : > { %1702 = vmatpush.msra.mxu2 %v1676_v29  ;;  %1725 = vmatpush.msra.mxu3 %v1677_v30  ;;  %v1809_v30 = vld [vmem:[#allocation16 + $0x2b8] sm:$0xff]  ;;  %v1802_v43 = vld [vmem:[#allocation16 + $0x248] sm:$0xff] }
 0x2a2   : > { %1639 = vmatpush.msra.mxu1 %v1594_v32  ;;  %1620 = vmatpush.msra.mxu0 %v1585_v48  ;;  %v1808_v32 = vld [vmem:[#allocation16 + $0x2a8] sm:$0xff] }
 0x2a3   : > { %1703 = vmatpush.msra.mxu2 %v1674_v34  ;;  %1726 = vmatpush.msra.mxu3 %v1675_v39  ;;  %v1807_v34 = vld [vmem:[#allocation16 + $0x298] sm:$0xff] }
 0x2a4   : > { %1640 = vmatpush.msra.mxu1 %v1592_v36  ;;  %1621 = vmatpush.msra.mxu0 %v1583_v55  ;;  %v1805_v36 = vld [vmem:[#allocation16 + $0x278] sm:$0xff] }
 0x2a5   : > { %1704 = vmatpush.msra.mxu2 %v1672_v40  ;;  %1727 = vmatpush.msra.mxu3 %v1673_v41  ;;  %v1804_v40 = vld [vmem:[#allocation16 + $0x268] sm:$0xff]  ;;  %v1803_v41 = vld [vmem:[#allocation16 + $0x258] sm:$0xff] }
 0x2a6   : > { %1641 = vmatpush.msra.mxu1 %v1590_v38  ;;  %1622 = vmatpush.msra.mxu0 %v1581_v57 }
 0x2a7   : > { %1705 = vmatpush.msra.mxu2 %v1670_v46  ;;  %1728 = vmatpush.msra.mxu3 %v1671_v47  ;;  %v1745_v46 = vld [vmem:[#allocation15 + $0x4] sm:$0x3] }
 0x2a8   : > { %1642 = vmatpush.msra.mxu1 %v1588_v45  ;;  %1623 = vmatpush.msra.mxu0 %v1579_v0  ;;  %v1801_v47 = vld [vmem:[#allocation16 + $0x238] sm:$0xff] }
 0x2a9   : > { %1706 = vmatpush.msra.mxu2 %v1668_v50  ;;  %1729 = vmatpush.msra.mxu3 %v1669_v51  ;;  %v1800_v51 = vld [vmem:[#allocation16 + $0x228] sm:$0xff] }
 0x2aa   : > { %1643 = vmatpush.msra.mxu1 %v1586_v49  ;;  %1624 = vmatpush.msra.mxu0 %v1577_v6 }
 0x2ab   : > { %1707 = vmatpush.msra.mxu2 %v1666_v54  ;;  %1730 = vmatpush.msra.mxu3 %v1667_v56  ;;  %v1799_v56 = vld [vmem:[#allocation16 + $0x218] sm:$0xff] }
 0x2ac   : > { %1644 = vmatpush.msra.mxu1 %v1584_v52  ;;  %v1748_v52 = vperm.slane %v1745_v46, 1 }
 0x2ad   : > { %1708 = vmatpush.msra.mxu2 %v1664_v61  ;;  %1731 = vmatpush.msra.mxu3 %v1665_v63 }
 0x2ae   : > { %1645 = vmatpush.msra.mxu1 %v1582_v58  ;;  %v1798_v58 = vld [vmem:[#allocation16 + $0x208] sm:$0xff] }
 0x2af   : > { %1709 = vmatpush.msra.mxu2 %v1662_v3  ;;  %1732 = vmatpush.msra.mxu3 %v1663_v5 }
 0x2b0   : > { %1646 = vmatpush.msra.mxu1 %v1580_v2 }
 0x2b2   : > { %1647 = vmatpush.msra.mxu1 %v1578_v8 }
 0x313   : > { %v1369_v14 = vpop.f32.mrf.mxu2  ;;  %v1392_v62 = vpop.f32.mrf.mxu3 }
 0x314   : > { %v1370_v15 = vadd.f32 %v1369_v14, %v1348_v12  ;;  %v1393_v7 = vadd.f32 %v1392_v62, %v1349_v13 }
 0x316   : > { %v1398_v16 = vadd.f32 %v1370_v15, %v2833_v59  ;;  %v2906_v17 = vadd.f32 %v1393_v7, %v912_v44  ;;  %v1659_v59 = vld [vmem:[%s2750_s28] sm:$0xff] }
 0x318   : > { %v1402_v18 = vmul.f32 %v2830_v53, %v1398_v16 }
 0x31a   : > { %1404 = vst [vmem:[#allocation2 + $0x8] sm:$0xff] %v1402_v18  ;;  %1544 = vmatmul.f32.vlgmr.msrb.gmra.mxu2 %v1402_v18  ;;  %1567 = vmatmul.f32.vlgmr.msrb.gmra.mxu3 %v1402_v18 }
 0x31b   : > { %v1372_v19 = vpop.f32.mrf.mxu2  ;;  %v2913_v25 = vpop.f32.mrf.mxu3 }
 0x31c   : > { %v1373_v20 = vadd.f32 %v1372_v19, %v1348_v12 }
 0x31e   : > { %v1399_v21 = vadd.f32 %v1373_v20, %v2841_v4  ;;  %v1747_v20 = vperm.slane %v1745_v46, 0 }
 0x320   : > { %v1403_v10 = vmul.f32 %v2838_v1, %v1399_v21 }
 0x321   : > { %v1447_v23 = vld [vmem:[#allocation2 + $0x4] sm:$0xff] }
 0x322   : > { %1405 = vst [vmem:[#allocation2 + $0x10] sm:$0xff] %v1403_v10  ;;  %1498 = vmatmul.f32.vlgmr.msrb.gmra.mxu0 %v1447_v23  ;;  %1521 = vmatmul.f32.vlgmr.msrb.gmra.mxu1 %v1447_v23 }
 0x323   : > { %1547 = vmatmul.f32.gmra.mxu2 %v1403_v10  ;;  %1570 = vmatmul.f32.gmra.mxu3 %v1403_v10 }
 0x324   : > { %1819 = vmatpush.msrb.mxu0 %v1813_v42  ;;  %2054 = vmatpush.msrb.mxu1 %v1813_v42 }
 0x326   : > { %1820 = vmatpush.msrb.mxu0 %v1812_v26  ;;  %2055 = vmatpush.msrb.mxu1 %v1812_v26 }
 0x328   : > { %1821 = vmatpush.msrb.mxu0 %v1811_v27  ;;  %2056 = vmatpush.msrb.mxu1 %v1811_v27 }
 0x329   : > { %v1448_v22 = vld [vmem:[#allocation2 + $0xc] sm:$0xff]  ;;  %v1575_v4 = vld [vmem:[#allocation2 + $0x14] sm:$0xff] }
 0x32a   : > { %1501 = vmatmul.f32.gmra.mxu0 %v1448_v22  ;;  %1524 = vmatmul.f32.gmra.mxu1 %v1448_v22 }
 0x32b   : > { %1710 = vmatmul.f32.vlgmr.msra.gmra.mxu2 %v1659_v59  ;;  %1733 = vmatmul.f32.vlgmr.msra.gmra.mxu3 %v1659_v59 }
 0x32c   : > { %1822 = vmatpush.msrb.mxu0 %v1810_v28  ;;  %2057 = vmatpush.msrb.mxu1 %v1810_v28 }
 0x32e   : > { %1823 = vmatpush.msrb.mxu0 %v1809_v30  ;;  %2058 = vmatpush.msrb.mxu1 %v1809_v30 }
 0x330   : > { %1824 = vmatpush.msrb.mxu0 %v1808_v32  ;;  %2059 = vmatpush.msrb.mxu1 %v1808_v32 }
 0x332   : > { %1625 = vmatmul.f32.vlgmr.msra.gmra.mxu0 %v1448_v22  ;;  %1648 = vmatmul.f32.vlgmr.msra.gmra.mxu1 %v1448_v22 }
 0x333   : > { %1713 = vmatmul.f32.gmra.mxu2 %v1660_v24  ;;  %1736 = vmatmul.f32.gmra.mxu3 %v1660_v24 }
 0x334   : > { %1825 = vmatpush.msrb.mxu0 %v1807_v34  ;;  %2060 = vmatpush.msrb.mxu1 %v1807_v34 }
 0x336   : > { %1826 = vmatpush.msrb.mxu0 %v1806_v35  ;;  %2061 = vmatpush.msrb.mxu1 %v1806_v35 }
 0x338   : > { %1827 = vmatpush.msrb.mxu0 %v1805_v36  ;;  %2062 = vmatpush.msrb.mxu1 %v1805_v36 }
 0x33a   : > { %1628 = vmatmul.f32.gmra.mxu0 %v1575_v4  ;;  %1651 = vmatmul.f32.gmra.mxu1 %v1575_v4 }
 0x33b   : > { %1828 = vmatpush.msrb.mxu0 %v1804_v40  ;;  %2063 = vmatpush.msrb.mxu1 %v1804_v40 }
 0x33d   : > { %1829 = vmatpush.msrb.mxu0 %v1803_v41  ;;  %2064 = vmatpush.msrb.mxu1 %v1803_v41 }
 0x33f   : > { %1830 = vmatpush.msrb.mxu0 %v1802_v43  ;;  %2065 = vmatpush.msrb.mxu1 %v1802_v43 }
 0x341   : > { %1831 = vmatpush.msrb.mxu0 %v1801_v47  ;;  %2066 = vmatpush.msrb.mxu1 %v1801_v47 }
 0x343   : > { %1832 = vmatpush.msrb.mxu0 %v1800_v51  ;;  %2067 = vmatpush.msrb.mxu1 %v1800_v51 }
 0x345   : > { %1833 = vmatpush.msrb.mxu0 %v1799_v56  ;;  %2068 = vmatpush.msrb.mxu1 %v1799_v56 }
 0x347   : > { %1834 = vmatpush.msrb.mxu0 %v1798_v58  ;;  %2069 = vmatpush.msrb.mxu1 %v1798_v58 }
 0x39d   : > { %v1568_v29 = vpop.f32.mrf.mxu3  ;;  %v1545_v45 = vpop.f32.mrf.mxu2 }
 0x39f   : > { %v1522_v31 = vpop.f32.mrf.mxu1  ;;  %v1499_v37 = vpop.f32.mrf.mxu0 }
 0x3a0   : > { %v1569_v48 = vadd.f32 %v1568_v29, %v1522_v31  ;;  %v1546_v62 = vadd.f32 %v1545_v45, %v1499_v37 }
 0x3a6   : > { %v1571_v38 = vpop.f32.mrf.mxu3  ;;  %v1548_v63 = vpop.f32.mrf.mxu2 }
 0x3a7   : > { %v1525_v39 = vpop.f32.mrf.mxu1  ;;  %v1502_v54 = vpop.f32.mrf.mxu0 }
 0x3a8   : > { %v1572_v0 = vadd.f32 %v1571_v38, %v1525_v39  ;;  %v1549_v10 = vadd.f32 %v1548_v63, %v1502_v54  ;;  %v1396_v63 = vadd.f32 %v2913_v25, %v1349_v13 }
 0x3ae   : > { %v1734_v49 = vpop.f32.mrf.mxu3  ;;  %v1711_v15 = vpop.f32.mrf.mxu2 }
 0x3af   : > { %v1649_v50 = vpop.f32.mrf.mxu1  ;;  %v1626_v8 = vpop.f32.mrf.mxu0 }
 0x3b0   : > { %v1656_v55 = vadd.f32 %v1649_v50, %v1569_v48  ;;  %v1655_v16 = vadd.f32 %v1626_v8, %v1546_v62 }
 0x3b2   : > { %v1741_v57 = vadd.f32 %v1734_v49, %v1656_v55  ;;  %v1740_v19 = vadd.f32 %v1711_v15, %v1655_v16 }
 0x3b4   : > { %v1752_v61 = vadd.f32 %v1748_v52, %v1741_v57  ;;  %v1751_v22 = vadd.f32 %v1747_v20, %v1740_v19 }
 0x3b6   : > { %v2044_v2 = vmul.f32 -1.442695, %v1752_v61  ;;  %v1737_v5 = vpop.f32.mrf.mxu3  ;;  %v1714_v26 = vpop.f32.mrf.mxu2 }
 0x3b7   : > { %v1652_v3 = vpop.f32.mrf.mxu1  ;;  %v1629_v21 = vpop.f32.mrf.mxu0 }
 0x3b8   : > { %2206 = vpow2.f32 %v2044_v2  ;;  %v1658_v6 = vadd.f32 %v1652_v3, %v1572_v0  ;;  %v1657_v24 = vadd.f32 %v1629_v21, %v1549_v10  ;;  %v915_v2 = vadd.f32 %v2852_v11, %v868_v9 }
 0x3ba   : > { %v1743_v12 = vadd.f32 %v1737_v5, %v1658_v6  ;;  %v1742_v28 = vadd.f32 %v1714_v26, %v1657_v24  ;;  %v1409_v3 = vadd.f32 %v1396_v63, %v915_v2 }
 0x3bc   : > { %v1754_v14 = vadd.f32 %v1748_v52, %v1743_v12  ;;  %v1753_v35 = vadd.f32 %v1747_v20, %v1742_v28  ;;  %v1815_v52 = vld [vmem:[#allocation18 + $0x4] sm:$0x3] }
 0x3bd   : > { %v1817_v56 = vperm.slane %v1815_v52, 1 }
 0x3be   : > { %v2207_v44 = vpop.eup %2206  ;;  %v2045_v7 = vmul.f32 -1.442695, %v1754_v14 }
 0x3bf   : > { %v1763_v18 = vadd.f32 1.0, %v2207_v44 }
 0x3c0   : > { %2208 = vpow2.f32 %v2045_v7 }
 0x3c1   : > { %2210 = vrcp.f32 %v1763_v18  ;;  %v1776_v29 = vand.u32 2147483648, %v1763_v18  ;;  %v1774_v31 = vand.u32 2147483647, %v1763_v18  ;;  %vm1770_vm3 = vweird.f32 %v1763_v18 }
 0x3c3   : > { %v1777_v36 = vor.u32 1.1754944e-38, %v1776_v29  ;;  %vm1775_vm5 = vcmp.eq.f32.partialorder %v1774_v31, 8.507059e+37 }
 0x3c6   : > { %v2209_v23 = vpop.eup %2208 }
 0x3c7   : > { %v2211_v59 = vpop.eup %2210  ;;  %v1764_v4 = vadd.f32 1.0, %v2209_v23 }
 0x3c8   : > { %v1766_v42 = vmul.f32 %v2211_v59, %v1763_v18  ;;  %vm1771_vm2 = vweird.f32 %v2211_v59 }
 0x3c9   : > { %2212 = vrcp.f32 %v1764_v4  ;;  %vm1772_vm4 = vmor %vm1770_vm3, %vm1771_vm2  ;;  %v1791_v45 = vand.u32 2147483648, %v1764_v4  ;;  %v1789_v47 = vand.u32 2147483647, %v1764_v4  ;;  %vm1785_vm7 = vweird.f32 %v1764_v4 }
 0x3ca   : > { %v1767_v27 = vsub.f32 1.0, %v1766_v42  ;;  %2214 = vtanh.f32 %v1751_v22 }
 0x3cb   : > { %2216 = vtanh.f32 %v1753_v35  ;;  %v1792_v49 = vor.u32 1.1754944e-38, %v1791_v45  ;;  %vm1790_vm9 = vcmp.eq.f32.partialorder %v1789_v47, 8.507059e+37 }
 0x3cc   : > { %v1768_v30 = vmul.f32 %v2211_v59, %v1767_v27 }
 0x3ce   : > { %v1769_v32 = vadd.f32 %v2211_v59, %v1768_v30 }
 0x3cf   : > { %v2213_v34 = vpop.eup %2212 }
 0x3d0   : > { %v1781_v37 = vmul.f32 %v2213_v34, %v1764_v4  ;;  %v1773_v38 = vsel %vm1772_vm4, %v2211_v59, %v1769_v32  ;;  %v2215_v39 = vpop.eup %2214  ;;  %vm1786_vm6 = vweird.f32 %v2213_v34 }
 0x3d1   : > { %v1778_v40 = vsel %vm1775_vm5, %v1777_v36, %v1773_v38  ;;  %vm1787_vm8 = vmor %vm1785_vm7, %vm1786_vm6  ;;  %v2217_v51 = vpop.eup %2216 }
 0x3d2   : > { %v1782_v41 = vsub.f32 1.0, %v1781_v37  ;;  %v1795_v43 = vmul.f32 %v2215_v39, %v1778_v40 }
 0x3d4   : > { %1835 = vmatmul.f32.vlgmr.msrb.gmra.mxu0 %v1795_v43  ;;  %v1783_v46 = vmul.f32 %v2213_v34, %v1782_v41 }
 0x3d6   : > { %v1784_v48 = vadd.f32 %v2213_v34, %v1783_v46 }
 0x3d8   : > { %v1788_v50 = vsel %vm1787_vm8, %v2213_v34, %v1784_v48 }
 0x3d9   : > { %v1793_v54 = vsel %vm1790_vm9, %v1792_v49, %v1788_v50 }
 0x3da   : > { %v1796_v55 = vmul.f32 %v2217_v51, %v1793_v54 }
 0x3dc   : > { %1838 = vmatmul.f32.vlgmr.msrb.gmra.mxu1 %v1796_v55 }
 0x451   : > { %v1836_v57 = vpop.f32.mrf.mxu0 }
 0x452   : > { %v1837_v58 = vadd.f32 %v1836_v57, %v1817_v56 }
 0x454   : > { %v1844_v61 = vadd.f32 %v1837_v58, %v2906_v17 }
 0x456   : > { %v1852_v0 = vmul.f32 %v2830_v53, %v1844_v61 }
 0x458   : > { %1854 = vst [vmem:[%s431_s24] sm:$0xff] %v1852_v0 }
 0x459   : > { %v1839_v17 = vpop.f32.mrf.mxu1 }
 0x45a   : > { %v1840_v60 = vadd.f32 %v1839_v17, %v1817_v56 }
 0x45c   : > { %v1845_v13 = vadd.f32 %v1840_v60, %v1409_v3 }
 0x45e   : > { %v1853_v53 = vmul.f32 %v2838_v1, %v1845_v13 }
 0x460   : > { %1855 = vst [vmem:[%s431_s24 + $0x8] sm:$0xff] %v1853_v53 }
 0x461   : > { %2470 = shalt.err (!%p2467_p5)
}
 0x462   : > { %s2542_s7 = smov 128   ;;  %s2543_s1 = smov 8  }
 0x463   : > { %2094 = dma.vmem_to_hbm [thread:$0]  (%p2682_p0), %s1870_s27, 256, %s1872_s15, %s1857_s6, %s2542_s7, %s2542_s7, %s2543_s1  }
 0x464 PF: > { %s1886_s16 = sand.u32 1, %s2515_s9   ;;  %p2986_p10 = scmp.ge.s32.totalorder %s2527_s0, 2 }
 0x465   : > { %s1887_s30 = scalar_lea.sflag [#allocation9], %s1886_s16 }
 0x466   : > { %p2120_p11 = pnand %p2986_p10, %p2688_p6 }
 0x468   : > { %p2121_p12 = pneg %p2120_p11 }
 0x46a   : > { %2510 = dma.done.wait (%p2121_p12), %s1887_s30, 256  }
 0x46b   : > { %2512 = vsyncadd (%p2121_p12), %s1887_s30, 4294967040  ;;  %p34_p2 = scmp.ge.s32.totalorder %s2658_s29, 4   ;;  %s2987_s9 = smov %s2519_s10 }
 0x46c   : > { %s2988_s10 = smov %s2523_s11  ;;  %s2989_s11 = smov %s2670_s13 }
 0x46d   : > { %s2990_s0 = smov %s2658_s29  ;;  %36 = sbr.rel (!%p34_p2) target bundleno = 20 (0x14), region = 142 }
 0x472   :  { %1893 = vsyncpa [#allocation8], 1 }
 0x473   :  { %1895 = vsyncpa [#allocation8 + $0x1], 1 }
 0x474   :  { %1896 = vsyncpa [#allocation11], 1 }
 0x475   :  { %1898 = vsyncpa [#allocation11 + $0x1], 1 }
 0x476   :  { %1899 = vsyncpa [#allocation14], 1 }
 0x477   :  { %1900 = vsyncpa [#allocation17], 1 }
 0x478   :  { %1901 = vsyncpa [#allocation9], 1 }
 0x479   :  { %1903 = vsyncpa [#allocation9 + $0x1], 1 }

</bundles_post_ra>
